<compile_context>
chip_gen: v7x
topology: tpu7x:2x2x1
jax: 0.10.0
libtpu: 0.0.40
codegen_flags: <defaults>
</compile_context>

<pallas_src>
import jax
import jax.numpy as jnp
from jax.experimental import pallas as pl
from jax.experimental.pallas import tpu as pltpu


def _round_up(x, m):
    return ((x + m - 1) // m) * m


def mlp_kernel(x_ref,
               w1, b1, w2, b2, w3, b3, w4, b4, w5, b5,
               alpha_ref, o_ref):
    """One batch tile of the block-diagonally packed MLP.

    x_ref : (G*8,  TBG) f32  -- G independent batch sub-groups, batch on lanes
    w{i}  : (G*fo, G*fi) f32 -- block-diagonal weights, VMEM-resident
    b{i}  : (G*fo, 1)    f32
    alpha : (4,) f32 in SMEM -- one PReLU slope per layer
    o_ref : (G, TBG) f32     -- lane-dense output tile
    """
    h = x_ref[...]                                                     # (G*8, TBG)

    h = jnp.dot(w1[...], h, preferred_element_type=jnp.float32) + b1[...]
    h = jnp.where(h > 0.0, h, alpha_ref[0] * h)                        # (G*32, TBG)

    h = jnp.dot(w2[...], h, preferred_element_type=jnp.float32) + b2[...]
    h = jnp.where(h > 0.0, h, alpha_ref[1] * h)                        # (G*16, TBG)

    h = jnp.dot(w3[...], h, preferred_element_type=jnp.float32) + b3[...]
    h = jnp.where(h > 0.0, h, alpha_ref[2] * h)                        # (G*8, TBG)

    h = jnp.dot(w4[...], h, preferred_element_type=jnp.float32) + b4[...]
    h = jnp.where(h > 0.0, h, alpha_ref[3] * h)                        # (G*4, TBG)

    h = jnp.dot(w5[...], h, preferred_element_type=jnp.float32) + b5[...]  # (G, TBG)

    o_ref[...] = h.astype(o_ref.dtype)


def _prepare_packed_params(params, groups):
    """Block-diagonal weights (fill the MXU contraction) and tiled biases."""
    eye = jnp.eye(groups, dtype=jnp.float32)
    packed = {}
    for i in range(1, 6):
        packed[f"w{i}"] = jnp.kron(eye, params[f"w{i}"].astype(jnp.float32))
        packed[f"b{i}"] = jnp.tile(params[f"b{i}"].astype(jnp.float32), (groups, 1))
    packed["alpha"] = params["alpha"].astype(jnp.float32)
    return packed


def fc_model_forward(data, params, *, groups=8, tbg_max=1024):
    """Forward pass of the FCNN Model.

    data    : tuple of 8 arrays (p12, p24, p234, p135, p345, p1234, p1345, p45),
              each shape (B,).
    params  : dict from init_params().
    groups  : independent batch sub-groups packed per MXU push (block-diagonal
              weights).  8 fills the 256-wide MXU on v6e/v7x; use 4 on v5e.
    tbg_max : max lanes (batch samples) per group per grid step.  Total batch
              tile per step is groups * tbg.

    Returns (B, 1) float32, matching the PyTorch module output.
    """
    assert len(data) == 8
    G = int(groups)
    B = data[0].shape[0]

    # ---- batch-tile geometry (lane-dense, padded to multiples of 128) ----
    Bg_min = _round_up(max(pl.cdiv(B, G), 1), 128)      # padded lanes per group
    tbg = min(_round_up(tbg_max, 128), Bg_min)
    if Bg_min // tbg < 2 and Bg_min >= 256:
        # Keep >=2 grid steps so v7x megacore ("parallel") can split the batch.
        tbg = max(128, (Bg_min // 2 // 128) * 128)
    Bg = _round_up(Bg_min, tbg)
    B_pad = G * Bg
    num_steps = Bg // tbg

    # ---- pack inputs: (8, B) -> (G*8, Bg); group g holds batch samples
    #      [g*Bg, (g+1)*Bg); batch stays on the lane axis. Zero padding keeps
    #      the extra lanes numerically harmless (they are sliced off below).
    x = jnp.stack([jnp.asarray(p).astype(jnp.float32) for p in data], axis=0)
    x = jnp.pad(x, ((0, 0), (0, B_pad - B)))
    x = x.reshape(8, G, Bg).transpose(1, 0, 2).reshape(G * 8, Bg)

    pp = _prepare_packed_params(params, G)

    def resident(arr):          # weights/biases: DMA'd once, stay VMEM-resident
        return pl.BlockSpec(arr.shape, lambda i: (0, 0))

    in_specs = [pl.BlockSpec((G * 8, tbg), lambda i: (0, i))]   # one DMA / step
    operands = [x]
    for i in range(1, 6):
        w, b = pp[f"w{i}"], pp[f"b{i}"]
        in_specs += [resident(w), resident(b)]
        operands += [w, b]
    in_specs.append(pl.BlockSpec(memory_space=pltpu.MemorySpace.SMEM))
    operands.append(pp["alpha"])

    out = pl.pallas_call(
        mlp_kernel,
        out_shape=jax.ShapeDtypeStruct((G, Bg), jnp.float32),
        grid=(num_steps,),
        in_specs=in_specs,
        out_specs=pl.BlockSpec((G, tbg), lambda i: (0, i)),
        compiler_params=pltpu.CompilerParams(
            dimension_semantics=("parallel",)),
    )(*operands)

    # unpack: (G, Bg) -> (B_pad,) -> (B, 1)
    return out.reshape(B_pad)[:B].reshape(B, 1)


def init_params(key):
    """Deterministic parameter init. Weights are (fout, fin), biases (fout, 1)
    so the kernel computes W @ x + b (PyTorch Linear layout, batch on lanes)."""
    dims = [(8, 32), (32, 16), (16, 8), (8, 4), (4, 1)]
    params = {}
    for i, (fin, fout) in enumerate(dims, start=1):
        key, kw, kb = jax.random.split(key, 3)
        bound = 1.0 / (fin ** 0.5)       # PyTorch Linear default init range
        params[f"w{i}"] = jax.random.uniform(
            kw, (fout, fin), jnp.float32, minval=-bound, maxval=bound)
        params[f"b{i}"] = jax.random.uniform(
            kb, (fout, 1), jnp.float32, minval=-bound, maxval=bound)
    # 4 PReLU layers, each a single alpha initialized to 0.25 (PyTorch default).
    params["alpha"] = jnp.full((4,), 0.25, dtype=jnp.float32)
    return params


def reference_forward(data, params):
    """Pure-JAX reference for correctness checking."""
    x = jnp.stack([jnp.asarray(p, jnp.float32) for p in data], axis=0)  # (8, B)
    h = x
    for i in range(1, 5):
        h = params[f"w{i}"] @ h + params[f"b{i}"]
        a = params["alpha"][i - 1]
        h = jnp.where(h > 0, h, a * h)
    h = params["w5"] @ h + params["b5"]                                  # (1, B)
    return h.T                                                           # (B, 1)


if __name__ == "__main__":
    key = jax.random.PRNGKey(0)
    pkey, dkey = jax.random.split(key)
    params = init_params(pkey)

    # Demo 1: batch that exercises a multi-step grid (2 steps with G=8, tbg=128).
    B = 2048
    dkeys = jax.random.split(dkey, 8)
    data = tuple(jax.random.normal(k, (B,), jnp.float32) for k in dkeys)

    out = fc_model_forward(data, params)
    out = jax.block_until_ready(out)
    ref = reference_forward(data, params)
    assert out.shape == (B, 1), out.shape
    assert jnp.allclose(out, ref, atol=1e-4, rtol=1e-4)

    # Demo 2: ragged batch (exercises lane padding / partial unpack).
    B2 = 777
    dkeys2 = jax.random.split(jax.random.PRNGKey(1), 8)
    data2 = tuple(jax.random.normal(k, (B2,), jnp.float32) for k in dkeys2)
    out2 = jax.block_until_ready(fc_model_forward(data2, params))
    ref2 = reference_forward(data2, params)
    assert out2.shape == (B2, 1), out2.shape
    assert jnp.allclose(out2, ref2, atol=1e-4, rtol=1e-4)

    print("KERNEL_OK")
</pallas_src>

<mosaic_0001>
module attributes {stable_mosaic.version = 11 : i64} {
  func.func @mlp_kernel(%arg0: i32, %arg1: memref<64x128xf32, #tpu.memory_space<vmem>>, %arg2: memref<256x64xf32, #tpu.memory_space<vmem>>, %arg3: memref<256x1xf32, #tpu.memory_space<vmem>>, %arg4: memref<128x256xf32, #tpu.memory_space<vmem>>, %arg5: memref<128x1xf32, #tpu.memory_space<vmem>>, %arg6: memref<64x128xf32, #tpu.memory_space<vmem>>, %arg7: memref<64x1xf32, #tpu.memory_space<vmem>>, %arg8: memref<32x64xf32, #tpu.memory_space<vmem>>, %arg9: memref<32x1xf32, #tpu.memory_space<vmem>>, %arg10: memref<8x32xf32, #tpu.memory_space<vmem>>, %arg11: memref<8x1xf32, #tpu.memory_space<vmem>>, %arg12: memref<4xf32, #tpu.memory_space<smem>>, %arg13: memref<8x128xf32, #tpu.memory_space<vmem>>) attributes {dimension_semantics = [#tpu.dimension_semantics<parallel>], iteration_bounds = array<i64: 2>, scalar_prefetch = 0 : i64, scratch_operands = 0 : i64, tpu.core_type = #tpu.core_type<tc>, window_params = [{transform_indices = @transform_0, window_bounds = array<i64: 64, 128>}, {pipeline_mode = #tpu.pipeline_mode<synchronous>, transform_indices = @transform_1, window_bounds = array<i64: 256, 64>}, {pipeline_mode = #tpu.pipeline_mode<synchronous>, transform_indices = @transform_2, window_bounds = array<i64: 256, 1>}, {pipeline_mode = #tpu.pipeline_mode<synchronous>, transform_indices = @transform_3, window_bounds = array<i64: 128, 256>}, {pipeline_mode = #tpu.pipeline_mode<synchronous>, transform_indices = @transform_4, window_bounds = array<i64: 128, 1>}, {pipeline_mode = #tpu.pipeline_mode<synchronous>, transform_indices = @transform_5, window_bounds = array<i64: 64, 128>}, {pipeline_mode = #tpu.pipeline_mode<synchronous>, transform_indices = @transform_6, window_bounds = array<i64: 64, 1>}, {pipeline_mode = #tpu.pipeline_mode<synchronous>, transform_indices = @transform_7, window_bounds = array<i64: 32, 64>}, {pipeline_mode = #tpu.pipeline_mode<synchronous>, transform_indices = @transform_8, window_bounds = array<i64: 32, 1>}, {pipeline_mode = #tpu.pipeline_mode<synchronous>, transform_indices = @transform_9, window_bounds = array<i64: 8, 32>}, {pipeline_mode = #tpu.pipeline_mode<synchronous>, transform_indices = @transform_10, window_bounds = array<i64: 8, 1>}, {transform_indices = @transform_11, window_bounds = array<i64: 4>}, {transform_indices = @transform_12, window_bounds = array<i64: 8, 128>}]} {
    %c0 = arith.constant 0 : index
    %c0_0 = arith.constant 0 : index
    %0 = vector.load %arg1[%c0, %c0_0] : memref<64x128xf32, #tpu.memory_space<vmem>>, vector<64x128xf32>
    %c0_1 = arith.constant 0 : index
    %c0_2 = arith.constant 0 : index
    %1 = vector.load %arg2[%c0_1, %c0_2] : memref<256x64xf32, #tpu.memory_space<vmem>>, vector<256x64xf32>
    %cst = arith.constant dense<0.000000e+00> : vector<256x128xf32>
    %2 = tpu.matmul %1, %0, %cst {dimension_numbers = #tpu.dot_dimension_numbers<[1], [0], [0], [1], [0, 0, 1, 1], [], []>} : vector<256x64xf32>, vector<64x128xf32>, vector<256x128xf32> -> vector<256x128xf32>
    %c0_3 = arith.constant 0 : index
    %c0_4 = arith.constant 0 : index
    %3 = vector.load %arg3[%c0_3, %c0_4] : memref<256x1xf32, #tpu.memory_space<vmem>>, vector<256x1xf32>
    %4 = vector.broadcast %3 : vector<256x1xf32> to vector<256x128xf32>
    %5 = arith.addf %2, %4 : vector<256x128xf32>
    %cst_5 = arith.constant 0.000000e+00 : f32
    %6 = vector.broadcast %cst_5 : f32 to vector<256x128xf32>
    %7 = arith.cmpf ogt, %5, %6 : vector<256x128xf32>
    %c0_6 = arith.constant 0 : index
    %8 = memref.load %arg12[%c0_6] : memref<4xf32, #tpu.memory_space<smem>>
    %9 = vector.broadcast %8 : f32 to vector<256x128xf32>
    %10 = arith.mulf %9, %5 : vector<256x128xf32>
    %11 = arith.select %7, %5, %10 : vector<256x128xi1>, vector<256x128xf32>
    %c0_7 = arith.constant 0 : index
    %c0_8 = arith.constant 0 : index
    %12 = vector.load %arg4[%c0_7, %c0_8] : memref<128x256xf32, #tpu.memory_space<vmem>>, vector<128x256xf32>
    %cst_9 = arith.constant dense<0.000000e+00> : vector<128x128xf32>
    %13 = tpu.matmul %12, %11, %cst_9 {dimension_numbers = #tpu.dot_dimension_numbers<[1], [0], [0], [1], [0, 0, 1, 1], [], []>} : vector<128x256xf32>, vector<256x128xf32>, vector<128x128xf32> -> vector<128x128xf32>
    %c0_10 = arith.constant 0 : index
    %c0_11 = arith.constant 0 : index
    %14 = vector.load %arg5[%c0_10, %c0_11] : memref<128x1xf32, #tpu.memory_space<vmem>>, vector<128x1xf32>
    %15 = vector.broadcast %14 : vector<128x1xf32> to vector<128x128xf32>
    %16 = arith.addf %13, %15 : vector<128x128xf32>
    %cst_12 = arith.constant 0.000000e+00 : f32
    %17 = vector.broadcast %cst_12 : f32 to vector<128x128xf32>
    %18 = arith.cmpf ogt, %16, %17 : vector<128x128xf32>
    %c1 = arith.constant 1 : index
    %19 = memref.load %arg12[%c1] : memref<4xf32, #tpu.memory_space<smem>>
    %20 = vector.broadcast %19 : f32 to vector<128x128xf32>
    %21 = arith.mulf %20, %16 : vector<128x128xf32>
    %22 = arith.select %18, %16, %21 : vector<128x128xi1>, vector<128x128xf32>
    %c0_13 = arith.constant 0 : index
    %c0_14 = arith.constant 0 : index
    %23 = vector.load %arg6[%c0_13, %c0_14] : memref<64x128xf32, #tpu.memory_space<vmem>>, vector<64x128xf32>
    %cst_15 = arith.constant dense<0.000000e+00> : vector<64x128xf32>
    %24 = tpu.matmul %23, %22, %cst_15 {dimension_numbers = #tpu.dot_dimension_numbers<[1], [0], [0], [1], [0, 0, 1, 1], [], []>} : vector<64x128xf32>, vector<128x128xf32>, vector<64x128xf32> -> vector<64x128xf32>
    %c0_16 = arith.constant 0 : index
    %c0_17 = arith.constant 0 : index
    %25 = vector.load %arg7[%c0_16, %c0_17] : memref<64x1xf32, #tpu.memory_space<vmem>>, vector<64x1xf32>
    %26 = vector.broadcast %25 : vector<64x1xf32> to vector<64x128xf32>
    %27 = arith.addf %24, %26 : vector<64x128xf32>
    %cst_18 = arith.constant 0.000000e+00 : f32
    %28 = vector.broadcast %cst_18 : f32 to vector<64x128xf32>
    %29 = arith.cmpf ogt, %27, %28 : vector<64x128xf32>
    %c2 = arith.constant 2 : index
    %30 = memref.load %arg12[%c2] : memref<4xf32, #tpu.memory_space<smem>>
    %31 = vector.broadcast %30 : f32 to vector<64x128xf32>
    %32 = arith.mulf %31, %27 : vector<64x128xf32>
    %33 = arith.select %29, %27, %32 : vector<64x128xi1>, vector<64x128xf32>
    %c0_19 = arith.constant 0 : index
    %c0_20 = arith.constant 0 : index
    %34 = vector.load %arg8[%c0_19, %c0_20] : memref<32x64xf32, #tpu.memory_space<vmem>>, vector<32x64xf32>
    %cst_21 = arith.constant dense<0.000000e+00> : vector<32x128xf32>
    %35 = tpu.matmul %34, %33, %cst_21 {dimension_numbers = #tpu.dot_dimension_numbers<[1], [0], [0], [1], [0, 0, 1, 1], [], []>} : vector<32x64xf32>, vector<64x128xf32>, vector<32x128xf32> -> vector<32x128xf32>
    %c0_22 = arith.constant 0 : index
    %c0_23 = arith.constant 0 : index
    %36 = vector.load %arg9[%c0_22, %c0_23] : memref<32x1xf32, #tpu.memory_space<vmem>>, vector<32x1xf32>
    %37 = vector.broadcast %36 : vector<32x1xf32> to vector<32x128xf32>
    %38 = arith.addf %35, %37 : vector<32x128xf32>
    %cst_24 = arith.constant 0.000000e+00 : f32
    %39 = vector.broadcast %cst_24 : f32 to vector<32x128xf32>
    %40 = arith.cmpf ogt, %38, %39 : vector<32x128xf32>
    %c3 = arith.constant 3 : index
    %41 = memref.load %arg12[%c3] : memref<4xf32, #tpu.memory_space<smem>>
    %42 = vector.broadcast %41 : f32 to vector<32x128xf32>
    %43 = arith.mulf %42, %38 : vector<32x128xf32>
    %44 = arith.select %40, %38, %43 : vector<32x128xi1>, vector<32x128xf32>
    %c0_25 = arith.constant 0 : index
    %c0_26 = arith.constant 0 : index
    %45 = vector.load %arg10[%c0_25, %c0_26] : memref<8x32xf32, #tpu.memory_space<vmem>>, vector<8x32xf32>
    %cst_27 = arith.constant dense<0.000000e+00> : vector<8x128xf32>
    %46 = tpu.matmul %45, %44, %cst_27 {dimension_numbers = #tpu.dot_dimension_numbers<[1], [0], [0], [1], [0, 0, 1, 1], [], []>} : vector<8x32xf32>, vector<32x128xf32>, vector<8x128xf32> -> vector<8x128xf32>
    %c0_28 = arith.constant 0 : index
    %c0_29 = arith.constant 0 : index
    %47 = vector.load %arg11[%c0_28, %c0_29] : memref<8x1xf32, #tpu.memory_space<vmem>>, vector<8x1xf32>
    %48 = vector.broadcast %47 : vector<8x1xf32> to vector<8x128xf32>
    %49 = arith.addf %46, %48 : vector<8x128xf32>
    %c0_30 = arith.constant 0 : index
    %c0_31 = arith.constant 0 : index
    %50 = vector.load %arg13[%c0_30, %c0_31] : memref<8x128xf32, #tpu.memory_space<vmem>>, vector<8x128xf32>
    tpu.vector_store %arg13[%c0_30, %c0_31], %49 {strides = array<i32>} : memref<8x128xf32, #tpu.memory_space<vmem>>, vector<8x128xf32>,
    return
  }
  func.func @transform_0(%arg0: i32) -> (i32, i32) {
    %c0_i32 = arith.constant 0 : i32
    %c0_i32_0 = arith.constant 0 : i32
    return %c0_i32, %arg0 : i32, i32
  }
  func.func @transform_1(%arg0: i32) -> (i32, i32) {
    %c0_i32 = arith.constant 0 : i32
    %c0_i32_0 = arith.constant 0 : i32
    %c0_i32_1 = arith.constant 0 : i32
    return %c0_i32, %c0_i32_0 : i32, i32
  }
  func.func @transform_2(%arg0: i32) -> (i32, i32) {
    %c0_i32 = arith.constant 0 : i32
    %c0_i32_0 = arith.constant 0 : i32
    %c0_i32_1 = arith.constant 0 : i32
    return %c0_i32, %c0_i32_0 : i32, i32
  }
  func.func @transform_3(%arg0: i32) -> (i32, i32) {
    %c0_i32 = arith.constant 0 : i32
    %c0_i32_0 = arith.constant 0 : i32
    %c0_i32_1 = arith.constant 0 : i32
    return %c0_i32, %c0_i32_0 : i32, i32
  }
  func.func @transform_4(%arg0: i32) -> (i32, i32) {
    %c0_i32 = arith.constant 0 : i32
    %c0_i32_0 = arith.constant 0 : i32
    %c0_i32_1 = arith.constant 0 : i32
    return %c0_i32, %c0_i32_0 : i32, i32
  }
  func.func @transform_5(%arg0: i32) -> (i32, i32) {
    %c0_i32 = arith.constant 0 : i32
    %c0_i32_0 = arith.constant 0 : i32
    %c0_i32_1 = arith.constant 0 : i32
    return %c0_i32, %c0_i32_0 : i32, i32
  }
  func.func @transform_6(%arg0: i32) -> (i32, i32) {
    %c0_i32 = arith.constant 0 : i32
    %c0_i32_0 = arith.constant 0 : i32
    %c0_i32_1 = arith.constant 0 : i32
    return %c0_i32, %c0_i32_0 : i32, i32
  }
  func.func @transform_7(%arg0: i32) -> (i32, i32) {
    %c0_i32 = arith.constant 0 : i32
    %c0_i32_0 = arith.constant 0 : i32
    %c0_i32_1 = arith.constant 0 : i32
    return %c0_i32, %c0_i32_0 : i32, i32
  }
  func.func @transform_8(%arg0: i32) -> (i32, i32) {
    %c0_i32 = arith.constant 0 : i32
    %c0_i32_0 = arith.constant 0 : i32
    %c0_i32_1 = arith.constant 0 : i32
    return %c0_i32, %c0_i32_0 : i32, i32
  }
  func.func @transform_9(%arg0: i32) -> (i32, i32) {
    %c0_i32 = arith.constant 0 : i32
    %c0_i32_0 = arith.constant 0 : i32
    %c0_i32_1 = arith.constant 0 : i32
    return %c0_i32, %c0_i32_0 : i32, i32
  }
  func.func @transform_10(%arg0: i32) -> (i32, i32) {
    %c0_i32 = arith.constant 0 : i32
    %c0_i32_0 = arith.constant 0 : i32
    %c0_i32_1 = arith.constant 0 : i32
    return %c0_i32, %c0_i32_0 : i32, i32
  }
  func.func @transform_11(%arg0: i32) -> i32 {
    %c0_i32 = arith.constant 0 : i32
    %c0_i32_0 = arith.constant 0 : i32
    return %c0_i32 : i32
  }
  func.func @transform_12(%arg0: i32) -> (i32, i32) {
    %c0_i32 = arith.constant 0 : i32
    %c0_i32_0 = arith.constant 0 : i32
    return %c0_i32, %arg0 : i32, i32
  }
}

</mosaic_0001>

<bundles_post_ra>
// kernel: tpu_custom_call.1
= control target key start
LH: loop header
LB: loop body
LE: loop exit
PB: predicated region body
PF: predicated region fallthrough
CT: control target
= control target key end

     0   :  { %s3396_s0 = inlined_call_operand.vmem [shape: f32[64,256], index: 0, kind: input, shape index: {}]   ;;  %s3397_s1 = inlined_call_operand.vmem [shape: f32[256,64], index: 1, kind: input, shape index: {}]   ;;  %s3398_s2 = inlined_call_operand.vmem [shape: f32[256,1], index: 2, kind: input, shape index: {}]   ;;  %s3399_s3 = inlined_call_operand.vmem [shape: f32[128,256], index: 3, kind: input, shape index: {}]   ;;  %s3400_s4 = inlined_call_operand.vmem [shape: f32[128,1], index: 4, kind: input, shape index: {}]   ;;  %s3401_s5 = inlined_call_operand.vmem [shape: f32[64,128], index: 5, kind: input, shape index: {}]   ;;  %s3402_s6 = inlined_call_operand.vmem [shape: f32[64,1], index: 6, kind: input, shape index: {}]   ;;  %s3403_s7 = inlined_call_operand.vmem [shape: f32[32,64], index: 7, kind: input, shape index: {}]   ;;  %s3404_s8 = inlined_call_operand.vmem [shape: f32[32,1], index: 8, kind: input, shape index: {}]   ;;  %s3405_s9 = inlined_call_operand.vmem [shape: f32[8,32], index: 9, kind: input, shape index: {}]   ;;  %s3406_s10 = inlined_call_operand.vmem [shape: f32[8,1], index: 10, kind: input, shape index: {}]   ;;  %s3407_s11 = inlined_call_operand.vmem [shape: f32[4], index: 11, kind: input, shape index: {}]   ;;  %s3408_s12 = inlined_call_operand.hbm [shape: f32[8,256], index: 12, kind: output, shape index: {}]  }
   0x1   :  { %3410 = sst [smem:[#allocation9_spill]] %s3396_s0 }
   0x2   :  { %3411 = sst [smem:[#allocation10_spill]] %s3407_s11 }
   0x3   :  { %17 = vsyncpa [#allocation5], 0 }
   0x4   :  { %18 = vsyncpa [#allocation4], 0 }
   0x5   :  { %20 = vsyncpa [#allocation4 + $0x1], 0  ;;  %s2630_s21 = smov 0   ;;  %s2632_s22 = smov 0  }
   0x6   :  { %s2634_s23 = smov 0   ;;  %s2636_s24 = smov 0  }
   0x7 LB: > { %s2651_s25 = sadd.s32 4294967295, %s2557_s24   ;;  %s1962_s26 = sadd.s32 4294967294, %s2557_s24   ;;  %s2557_s24 = sphi %s2636_s24, %s3423_s24   ;;  %s2553_s23 = sphi %s2634_s23, %s3422_s23   ;;  %s2549_s22 = sphi %s2632_s22, %s3421_s22   ;;  %s2545_s21 = sphi %s2630_s21, %s3420_s21  }
   0x8   : > { %s2655_s27 = sadd.s32 1, %s2557_s24   ;;  %s33_s28 = sadd.s32 1, %s2553_s23 }
   0x9   : > { %s30_s29 = ssub.s32 %s2557_s24, %s2655_s27  ;;  %p40_p0 = scmp.ne.s32.totalorder %s2553_s23, %s2549_s22 }
   0xa   : > { %p31_p1 = scmp.eq.s32.totalorder %s30_s29, 0  ;;  %p41_p2 = scmp.eq.s32.totalorder %s2557_s24, 0 }
   0xb   : > { %p301_p3 = scmp.eq.s32.totalorder %s2651_s25, 1  ;;  %p306_p4 = scmp.ne.s32.totalorder %s2549_s22, %s2545_s21 }
   0xc   : > { %s2667_s30 = scalar_select %p31_p1, %s2553_s23, %s33_s28  }
   0xd   : > { %p2669_p5 = por %p41_p2, %p40_p0  ;;  %p2673_p6 = por %p301_p3, %p40_p0 }
   0xe   : > { %p307_p7 = scmp.eq.s32.totalorder %s1962_s26, 1  ;;  %p1963_p8 = scmp.ge.s32.totalorder %s2557_s24, 1 }
   0xf   : > { %s3413_s14 = scalar_select %p2673_p6, 1, 0 }
  0x10   : > { %p314_p9 = scmp.lt.s32.totalorder %s2557_s24, 3  ;;  %p2679_p10 = por %p307_p7, %p306_p4 }
  0x11   : > { %p2434_p11 = scmp.eq.s32.totalorder %s2651_s25, 0  ;;  %s3416_s11 = sld [smem:[#allocation10_spill]] }
  0x12   : > { %s3414_s15 = scalar_select %p2679_p10, 1, 0 }
  0x13   : > { %p2684_p12 = pnand %p1963_p8, %p314_p9 }
  0x15   : > { %p2426_p13 = pneg %p2684_p12 }
  0x17   : > { %s357_s19 = sshll.u32 %s3416_s11, 4  ;;  %p2427_p0 = pnand %p2434_p11, %p2426_p13  ;;  %s358_s19 = int_to_ptr.vmem [resolvable:$true] %s357_s19 }
  0x18   : > { %s2476_s20 = scalar_lea.vmem %s358_s19, 16  ;;  %p2484_p7 = scmp.lt.s32.totalorder %s358_s19, %s358_s19 }
  0x19   : > { %p2477_p1 = scmp.ne.s32.totalorder %s358_s19, %s2476_s20  ;;  %p2478_p2 = pneg %p2427_p0 }
  0x1a   : > { %p2485_p8 = scmp.lt.s32.totalorder %s2476_s20, %s2476_s20 }
  0x1b   : > { %p2479_p3 = pnand %p2478_p2, %p2477_p1 }
  0x1c   : > { %p2486_p9 = por %p2485_p8, %p2484_p7 }
  0x1d   : > { %p2480_p4 = pneg %p2479_p3 }
  0x1f   : > { %p2487_p10 = pnand %p2486_p9, %p2480_p4 }
  0x21   : > { %2490 = shalt.err (!%p2487_p10)
}
  0x22   : > { %s2559_s26 = smov [#allocation3]   ;;  %p1965_p6 = scmp.ge.s32.totalorder %s2557_s24, 2 }
  0x23   : > { %2429 = dma.vmem_to_smem (!%p2427_p0), %s358_s19, 16, %s2559_s26, [#allocation5]  }
  0x24   : > { %364 = sbr.rel (%p1965_p6) target bundleno = 57 (0x39), region = 60 }
  0x2b   : > { %367 = sbr.rel (!%p2669_p5) target bundleno = 57 (0x39), region = 64  ;;  %s369_s28 = sand.u32 (%p2669_p5), 1, %s2553_s23  }
  0x2c   : > { %s1967_s29 = sshll.u32 (%p2669_p5), %s2557_s24, 3  ;;  %s1966_s17 = sshll.u32 (%p2669_p5), %s369_s28, 6 }
  0x2d   : > { %s3417_s0 = sld [smem:[#allocation9_spill]] (%p2669_p5)  ;;  %s371_s19 = scalar_lea.vmem (%p2669_p5), [#allocation2], %s1966_s17 }
  0x33   : > { %s373_s11 = scalar_lea.vmem %s3417_s0, %s1967_s29 }
  0x34   : > { %v415_v0 = vld [vmem:[%s373_s11] sm:$0xff]  ;;  %v417_v1 = vld [vmem:[%s373_s11 + $0x10] sm:$0xff] }
  0x35   : > { %v419_v2 = vld [vmem:[%s373_s11 + $0x20] sm:$0xff]  ;;  %416 = vst [vmem:[%s371_s19] sm:$0xff] %v415_v0  ;;  %418 = vst [vmem:[%s371_s19 + $0x8] sm:$0xff] %v417_v1  ;;  %v421_v3 = vld [vmem:[%s373_s11 + $0x30] sm:$0xff] }
  0x36   : > { %420 = vst [vmem:[%s371_s19 + $0x10] sm:$0xff] %v419_v2  ;;  %v423_v4 = vld [vmem:[%s373_s11 + $0x40] sm:$0xff]  ;;  %v425_v5 = vld [vmem:[%s373_s11 + $0x50] sm:$0xff]  ;;  %422 = vst [vmem:[%s371_s19 + $0x18] sm:$0xff] %v421_v3 }
  0x37   : > { %424 = vst [vmem:[%s371_s19 + $0x20] sm:$0xff] %v423_v4  ;;  %426 = vst [vmem:[%s371_s19 + $0x28] sm:$0xff] %v425_v5  ;;  %v427_v6 = vld [vmem:[%s373_s11 + $0x60] sm:$0xff]  ;;  %v429_v7 = vld [vmem:[%s373_s11 + $0x70] sm:$0xff] }
  0x38   : > { %428 = vst [vmem:[%s371_s19 + $0x30] sm:$0xff] %v427_v6  ;;  %430 = vst [vmem:[%s371_s19 + $0x38] sm:$0xff] %v429_v7 }
  0x39 PF: > { %439 = sbr.rel (%p2684_p12) target bundleno = 1349 (0x545), region = 102  ;;  %s2708_s13 = sand.u32 (!%p2684_p12), 1, %s2549_s22  }
  0x3a   : > { %s1969_s26 = sshll.u32 (!%p2684_p12), %s2708_s13, 6 }
  0x3b   : > { %s2711_s28 = scalar_lea.vmem (!%p2684_p12), [#allocation2], %s1969_s26 }
  0x40   : > { %2536 = dma.done.wait (%p2434_p11), [#allocation5], 16  }
  0x41   : > { %2538 = vsyncadd (%p2434_p11), [#allocation5], 4294967280 }
  0x42   : > { %452 = sfence }
  0x43   : > { %v544_v8 = vld [vmem:[%s3398_s2 + $0x80] sm:$0xff]  ;;  %v2560_v11 = vmov 0   ;;  %v489_v12 = vld [vmem:[%s2711_s28 + $0x8] sm:$0xff]  ;;  %v490_v14 = vld [vmem:[%s2711_s28 + $0x10] sm:$0xff]  ;;  %vm720_vm0 = vcmask 523264   ;;  %s1074_s16 = sld [smem:[#allocation3]] }
  0x44   : > { %v528_v9 = vld [vmem:[%s3398_s2] sm:$0xff]  ;;  %2475 = vset.pattern.permute.xlu1 %v2560_v11  ;;  %2474 = vset.pattern.permute.xlu0 %v2560_v11  ;;  %v491_v15 = vld [vmem:[%s2711_s28 + $0x18] sm:$0xff]  ;;  %v545_v16 = vld [vmem:[%s3398_s2 + $0x88] sm:$0xff]  ;;  %s2004_s19 = sld [smem:[#allocation3 + $0x1]]  ;;  %s2010_s29 = sld [smem:[#allocation3 + $0x3]] }
  0x45   : > { %v488_v10 = vld [vmem:[%s2711_s28] sm:$0xff]  ;;  %642 = vperm.xlu0 %2474, %v544_v8   ;;  %562 = vperm.xlu1 %2475, %v528_v9   ;;  %v529_v17 = vld [vmem:[%s3398_s2 + $0x8] sm:$0xff]  ;;  %v2322_v18 = vpack.c.bf16 %v491_v15, %v490_v14  ;;  %v546_v22 = vld [vmem:[%s3398_s2 + $0x90] sm:$0xff]  ;;  %s2013_s18 = sshll.u32 %s2651_s25, 7  ;;  %p3418_p10 = scmp.ne.s32.totalorder %s3413_s14, 0 }
  0x46   : > { %v2318_v13 = vpack.c.bf16 %v489_v12, %v488_v10  ;;  %v492_v19 = vld [vmem:[%s2711_s28 + $0x20] sm:$0xff]  ;;  %v493_v20 = vld [vmem:[%s2711_s28 + $0x28] sm:$0xff]  ;;  %v547_v23 = vld [vmem:[%s3398_s2 + $0x98] sm:$0xff]  ;;  %s3352_s11 = scalar_lea.hbm %s3408_s12, %s2013_s18  ;;  %s2564_s25 = smov [#allocation6]  }
  0x47   : > { %v496_v21 = vld [vmem:[%s3397_s1] sm:$0xff]  ;;  %v2326_v24 = vpack.c.bf16 %v493_v20, %v492_v19  ;;  %v494_v25 = vld [vmem:[%s2711_s28 + $0x30] sm:$0xff]  ;;  %v495_v26 = vld [vmem:[%s2711_s28 + $0x38] sm:$0xff]  ;;  %s2005_s28 = sld [smem:[#allocation3 + $0x2]]  ;;  %s2495_s17 = sshll.u32 %s2564_s25, 4  ;;  %s2496_s17 = int_to_ptr.vmem [resolvable:$false] %s2495_s17 }
  0x48   : > { %2319 = vmatprep.subr.bf16.mxu0 %v2318_v13  ;;  %2193 = vmatprep.mubr.msk.f32.mxu0 %vm720_vm0, %v496_v21  ;;  %v530_v27 = vld [vmem:[%s3398_s2 + $0x10] sm:$0xff]  ;;  %v531_v28 = vld [vmem:[%s3398_s2 + $0x18] sm:$0xff]  ;;  %v2330_v29 = vpack.c.bf16 %v495_v26, %v494_v25  ;;  %v548_v30 = vld [vmem:[%s3398_s2 + $0xa0] sm:$0xff] }
  0x49   : > { %2321 = vmatpush3.bf16.msra.mxu0 %v2318_v13  ;;  %647 = vperm.xlu0 %2474, %v545_v16   ;;  %v549_v31 = vld [vmem:[%s3398_s2 + $0xa8] sm:$0xff]  ;;  %v498_v33 = vld [vmem:[%s3397_s1 + $0x10] sm:$0xff]  ;;  %v532_v34 = vld [vmem:[%s3398_s2 + $0x20] sm:$0xff] }
  0x4a   : > { %567 = vperm.xlu1 %2475, %v529_v17   ;;  %2323 = vmatprep.subr.bf16.mxu0 %v2322_v18  ;;  %v497_v32 = vld [vmem:[%s3397_s1 + $0x8] sm:$0xff]  ;;  %v499_v36 = vld [vmem:[%s3397_s1 + $0x18] sm:$0xff]  ;;  %v500_v37 = vld [vmem:[%s3397_s1 + $0x20] sm:$0xff] }
  0x4b   : > { %v533_v35 = vld [vmem:[%s3398_s2 + $0x28] sm:$0xff]  ;;  %v550_v38 = vld [vmem:[%s3398_s2 + $0xb0] sm:$0xff]  ;;  %v551_v39 = vld [vmem:[%s3398_s2 + $0xb8] sm:$0xff] }
  0x4c   : > { %v501_v40 = vld [vmem:[%s3397_s1 + $0x28] sm:$0xff]  ;;  %v502_v41 = vld [vmem:[%s3397_s1 + $0x30] sm:$0xff]  ;;  %v535_v43 = vld [vmem:[%s3398_s2 + $0x38] sm:$0xff] }
  0x4d   : > { %2325 = vmatpush3.bf16.msra.mxu0 %v2322_v18  ;;  %652 = vperm.xlu0 %2474, %v546_v22   ;;  %v534_v42 = vld [vmem:[%s3398_s2 + $0x30] sm:$0xff]  ;;  %v503_v44 = vld [vmem:[%s3397_s1 + $0x38] sm:$0xff]  ;;  %v504_v45 = vld [vmem:[%s3397_s1 + $0x40] sm:$0xff] }
  0x4e   : > { %657 = vperm.xlu1 %2475, %v547_v23   ;;  %2327 = vmatprep.subr.bf16.mxu0 %v2326_v24  ;;  %v552_v46 = vld [vmem:[%s3398_s2 + $0xc0] sm:$0xff]  ;;  %v553_v47 = vld [vmem:[%s3398_s2 + $0xc8] sm:$0xff]  ;;  %v506_v49 = vld [vmem:[%s3397_s1 + $0x50] sm:$0xff] }
  0x4f   : > { %v505_v48 = vld [vmem:[%s3397_s1 + $0x48] sm:$0xff]  ;;  %v536_v50 = vld [vmem:[%s3398_s2 + $0x40] sm:$0xff]  ;;  %v507_v52 = vld [vmem:[%s3397_s1 + $0x58] sm:$0xff] }
  0x50   : > { %v537_v51 = vld [vmem:[%s3398_s2 + $0x48] sm:$0xff]  ;;  %v508_v53 = vld [vmem:[%s3397_s1 + $0x60] sm:$0xff]  ;;  %v554_v54 = vld [vmem:[%s3398_s2 + $0xd0] sm:$0xff] }
  0x51   : > { %2329 = vmatpush3.bf16.msra.mxu0 %v2326_v24  ;;  %572 = vperm.xlu0 %2474, %v530_v27   ;;  %v555_v55 = vld [vmem:[%s3398_s2 + $0xd8] sm:$0xff]  ;;  %v509_v56 = vld [vmem:[%s3397_s1 + $0x68] sm:$0xff]  ;;  %v510_v57 = vld [vmem:[%s3397_s1 + $0x70] sm:$0xff] }
  0x52   : > { %577 = vperm.xlu1 %2475, %v531_v28   ;;  %2331 = vmatprep.subr.bf16.mxu0 %v2330_v29  ;;  %v538_v58 = vld [vmem:[%s3398_s2 + $0x50] sm:$0xff]  ;;  %v539_v59 = vld [vmem:[%s3398_s2 + $0x58] sm:$0xff]  ;;  %v512_v61 = vld [vmem:[%s3397_s1 + $0x80] sm:$0xff] }
  0x53   : > { %v511_v60 = vld [vmem:[%s3397_s1 + $0x78] sm:$0xff]  ;;  %v556_v62 = vld [vmem:[%s3398_s2 + $0xe0] sm:$0xff]  ;;  %v557_v63 = vld [vmem:[%s3398_s2 + $0xe8] sm:$0xff] }
  0x54   : > { %v513_v0 = vld [vmem:[%s3397_s1 + $0x88] sm:$0xff]  ;;  %v514_v1 = vld [vmem:[%s3397_s1 + $0x90] sm:$0xff]  ;;  %v540_v2 = vld [vmem:[%s3398_s2 + $0x60] sm:$0xff] }
  0x55   : > { %2333 = vmatpush3.bf16.msra.mxu0 %v2330_v29  ;;  %662 = vperm.xlu0 %2474, %v548_v30   ;;  %v541_v3 = vld [vmem:[%s3398_s2 + $0x68] sm:$0xff]  ;;  %v515_v4 = vld [vmem:[%s3397_s1 + $0x98] sm:$0xff]  ;;  %v516_v5 = vld [vmem:[%s3397_s1 + $0xa0] sm:$0xff] }
  0x56   : > { %667 = vperm.xlu1 %2475, %v549_v31   ;;  %v558_v6 = vld [vmem:[%s3398_s2 + $0xf0] sm:$0xff]  ;;  %v559_v7 = vld [vmem:[%s3398_s2 + $0xf8] sm:$0xff]  ;;  %v517_v8 = vld [vmem:[%s3397_s1 + $0xa8] sm:$0xff] }
  0x57   : > { %v518_v9 = vld [vmem:[%s3397_s1 + $0xb0] sm:$0xff]  ;;  %v543_v11 = vld [vmem:[%s3398_s2 + $0x78] sm:$0xff]  ;;  %v520_v13 = vld [vmem:[%s3397_s1 + $0xc0] sm:$0xff] }
  0x58   : > { %2194 = vmatmul.mubr.msk.f32.vlgmr.msra.gmra.mrb[0].mxu0 %vm720_vm0, %v497_v32  ;;  %v542_v10 = vld [vmem:[%s3398_s2 + $0x70] sm:$0xff]  ;;  %v519_v12 = vld [vmem:[%s3397_s1 + $0xb8] sm:$0xff]  ;;  %v1172_v14 = vld [vmem:[%s3400_s4] sm:$0xff] }
  0x59   : > { %2196 = vmatprep.mubr.msk.f32.mxu0 %vm720_vm0, %v498_v33  ;;  %582 = vperm.xlu0 %2474, %v532_v34   ;;  %v1173_v15 = vld [vmem:[%s3400_s4 + $0x8] sm:$0xff]  ;;  %v522_v17 = vld [vmem:[%s3397_s1 + $0xd0] sm:$0xff]  ;;  %v1175_v19 = vld [vmem:[%s3400_s4 + $0x18] sm:$0xff] }
  0x5a   : > { %587 = vperm.xlu1 %2475, %v533_v35   ;;  %v521_v16 = vld [vmem:[%s3397_s1 + $0xc8] sm:$0xff]  ;;  %v1174_v18 = vld [vmem:[%s3400_s4 + $0x10] sm:$0xff]  ;;  %v523_v20 = vld [vmem:[%s3397_s1 + $0xd8] sm:$0xff] }
  0x5b   : > { %v524_v21 = vld [vmem:[%s3397_s1 + $0xe0] sm:$0xff]  ;;  %v1177_v23 = vld [vmem:[%s3400_s4 + $0x28] sm:$0xff]  ;;  %v526_v25 = vld [vmem:[%s3397_s1 + $0xf0] sm:$0xff] }
  0x5c   : > { %2197 = vmatmul.mubr.msk.f32.gmra.mrb[2].mxu0 %vm720_vm0, %v499_v36  ;;  %v1176_v22 = vld [vmem:[%s3400_s4 + $0x20] sm:$0xff]  ;;  %v525_v24 = vld [vmem:[%s3397_s1 + $0xe8] sm:$0xff]  ;;  %v1178_v26 = vld [vmem:[%s3400_s4 + $0x30] sm:$0xff] }
  0x5d   : > { %2199 = vmatprep.mubr.msk.f32.mxu0 %vm720_vm0, %v500_v37  ;;  %672 = vperm.xlu0 %2474, %v550_v38   ;;  %v1179_v27 = vld [vmem:[%s3400_s4 + $0x38] sm:$0xff]  ;;  %v1180_v29 = vld [vmem:[%s3400_s4 + $0x40] sm:$0xff]  ;;  %v1181_v30 = vld [vmem:[%s3400_s4 + $0x48] sm:$0xff] }
  0x5e   : > { %677 = vperm.xlu1 %2475, %v551_v39   ;;  %v527_v28 = vld [vmem:[%s3397_s1 + $0xf8] sm:$0xff]  ;;  %v1182_v31 = vld [vmem:[%s3400_s4 + $0x50] sm:$0xff]  ;;  %v1184_v33 = vld [vmem:[%s3400_s4 + $0x60] sm:$0xff] }
  0x5f   : > { %v1183_v32 = vld [vmem:[%s3400_s4 + $0x58] sm:$0xff]  ;;  %v1185_v34 = vld [vmem:[%s3400_s4 + $0x68] sm:$0xff]  ;;  %v1186_v35 = vld [vmem:[%s3400_s4 + $0x70] sm:$0xff] }
  0x60   : > { %2200 = vmatmul.mubr.msk.f32.gmra.mrb[4].mxu0 %vm720_vm0, %v501_v40  ;;  %v1187_v36 = vld [vmem:[%s3400_s4 + $0x78] sm:$0xff]  ;;  %v1471_v37 = vld [vmem:[%s3402_s6] sm:$0xff]  ;;  %v1472_v38 = vld [vmem:[%s3402_s6 + $0x8] sm:$0xff] }
  0x61   : > { %2202 = vmatprep.mubr.msk.f32.mxu0 %vm720_vm0, %v502_v41  ;;  %592 = vperm.xlu0 %2474, %v534_v42   ;;  %v1473_v39 = vld [vmem:[%s3402_s6 + $0x10] sm:$0xff]  ;;  %v1474_v40 = vld [vmem:[%s3402_s6 + $0x18] sm:$0xff]  ;;  %v1475_v41 = vld [vmem:[%s3402_s6 + $0x20] sm:$0xff] }
  0x62   : > { %597 = vperm.xlu1 %2475, %v535_v43   ;;  %v1476_v42 = vld [vmem:[%s3402_s6 + $0x28] sm:$0xff]  ;;  %v1477_v43 = vld [vmem:[%s3402_s6 + $0x30] sm:$0xff] }
  0x64   : > { %2203 = vmatmul.mubr.msk.f32.gmra.mrb[6].mxu0 %vm720_vm0, %v503_v44  ;;  %v1478_v44 = vld [vmem:[%s3402_s6 + $0x38] sm:$0xff] }
  0x65   : > { %2205 = vmatprep.mubr.msk.f32.mxu0 %vm720_vm0, %v504_v45  ;;  %682 = vperm.xlu0 %2474, %v552_v46   ;;  %v1654_v45 = vld [vmem:[%s3404_s8] sm:$0xff]  ;;  %v1655_v46 = vld [vmem:[%s3404_s8 + $0x8] sm:$0xff] }
  0x66   : > { %687 = vperm.xlu1 %2475, %v553_v47   ;;  %v1656_v47 = vld [vmem:[%s3404_s8 + $0x10] sm:$0xff] }
  0x68   : > { %2206 = vmatmul.mubr.msk.f32.gmra.mrb[8].mxu0 %vm720_vm0, %v505_v48  ;;  %v1657_v48 = vld [vmem:[%s3404_s8 + $0x18] sm:$0xff] }
  0x69   : > { %2208 = vmatprep.mubr.msk.f32.mxu0 %vm720_vm0, %v506_v49  ;;  %602 = vperm.xlu0 %2474, %v536_v50   ;;  %v1790_v49 = vld [vmem:[%s3406_s10] sm:$0xff] }
  0x6a   : > { %607 = vperm.xlu1 %2475, %v537_v51  }
  0x6c   : > { %2209 = vmatmul.mubr.msk.f32.gmra.mrb[10].mxu0 %vm720_vm0, %v507_v52  ;;  %v1141_v52 = vld [vmem:[%s3399_s3 + $0x8] sm:$0xff] }
  0x6d   : > { %2211 = vmatprep.mubr.msk.f32.mxu0 %vm720_vm0, %v508_v53  ;;  %692 = vperm.xlu0 %2474, %v554_v54  }
  0x6e   : > { %697 = vperm.xlu1 %2475, %v555_v55   ;;  %1332 = vmatprep.mubr.f32.mxu1 %v1141_v52 }
  0x70   : > { %2212 = vmatmul.mubr.msk.f32.gmra.mrb[12].mxu0 %vm720_vm0, %v509_v56 }
  0x71   : > { %2214 = vmatprep.mubr.msk.f32.mxu0 %vm720_vm0, %v510_v57  ;;  %612 = vperm.xlu0 %2474, %v538_v58  }
  0x72   : > { %617 = vperm.xlu1 %2475, %v539_v59  }
  0x74   : > { %2215 = vmatmul.mubr.msk.f32.gmra.mrb[14].mxu0 %vm720_vm0, %v511_v60 }
  0x75   : > { %2217 = vmatprep.mubr.msk.f32.mxu0 %vm720_vm0, %v512_v61  ;;  %702 = vperm.xlu0 %2474, %v556_v62  }
  0x76   : > { %707 = vperm.xlu1 %2475, %v557_v63  }
  0x78   : > { %2218 = vmatmul.mubr.msk.f32.gmra.mrb[16].mxu0 %vm720_vm0, %v513_v0 }
  0x79   : > { %2220 = vmatprep.mubr.msk.f32.mxu0 %vm720_vm0, %v514_v1  ;;  %622 = vperm.xlu0 %2474, %v540_v2  }
  0x7a   : > { %627 = vperm.xlu1 %2475, %v541_v3  }
  0x7c   : > { %2221 = vmatmul.mubr.msk.f32.gmra.mrb[18].mxu0 %vm720_vm0, %v515_v4 }
  0x7d   : > { %2223 = vmatprep.mubr.msk.f32.mxu0 %vm720_vm0, %v516_v5  ;;  %712 = vperm.xlu0 %2474, %v558_v6  }
  0x7e   : > { %717 = vperm.xlu1 %2475, %v559_v7  }
  0x80   : > { %2224 = vmatmul.mubr.msk.f32.gmra.mrb[20].mxu0 %vm720_vm0, %v517_v8 }
  0x81   : > { %2226 = vmatprep.mubr.msk.f32.mxu0 %vm720_vm0, %v518_v9  ;;  %632 = vperm.xlu0 %2474, %v542_v10   ;;  %v3063_v10 = vstv %s1074_s16 }
  0x82   : > { %637 = vperm.xlu1 %2475, %v543_v11  }
  0x84   : > { %2227 = vmatmul.mubr.msk.f32.gmra.mrb[22].mxu0 %vm720_vm0, %v519_v12 }
  0x85   : > { %2229 = vmatprep.mubr.msk.f32.mxu0 %vm720_vm0, %v520_v13  ;;  %1190 = vperm.xlu0 %2474, %v1172_v14  }
  0x86   : > { %1195 = vperm.xlu1 %2475, %v1173_v15  }
  0x88   : > { %2230 = vmatmul.mubr.msk.f32.gmra.mrb[24].mxu0 %vm720_vm0, %v521_v16 }
  0x89   : > { %2232 = vmatprep.mubr.msk.f32.mxu0 %vm720_vm0, %v522_v17  ;;  %1200 = vperm.xlu0 %2474, %v1174_v18  }
  0x8a   : > { %1205 = vperm.xlu1 %2475, %v1175_v19  }
  0x8c   : > { %2233 = vmatmul.mubr.msk.f32.gmra.mrb[26].mxu0 %vm720_vm0, %v523_v20 }
  0x8d   : > { %2235 = vmatprep.mubr.msk.f32.mxu0 %vm720_vm0, %v524_v21  ;;  %1210 = vperm.xlu0 %2474, %v1176_v22  }
  0x8e   : > { %1215 = vperm.xlu1 %2475, %v1177_v23  }
  0x90   : > { %2236 = vmatmul.mubr.msk.f32.gmra.mrb[28].mxu0 %vm720_vm0, %v525_v24 }
  0x91   : > { %2238 = vmatprep.mubr.msk.f32.mxu0 %vm720_vm0, %v526_v25  ;;  %1220 = vperm.xlu0 %2474, %v1178_v26  }
  0x92   : > { %1225 = vperm.xlu1 %2475, %v1179_v27  }
  0x94   : > { %2239 = vmatmul.mubr.msk.f32.gmra.mrb[30].mxu0 %vm720_vm0, %v527_v28 }
  0x95   : > { %1230 = vperm.xlu0 %2474, %v1180_v29  }
  0x96   : > { %1235 = vperm.xlu1 %2475, %v1181_v30  }
  0x99   : > { %1240 = vperm.xlu0 %2474, %v1182_v31  }
  0x9a   : > { %1245 = vperm.xlu1 %2475, %v1183_v32  }
  0x9d   : > { %1250 = vperm.xlu0 %2474, %v1184_v33  }
  0x9e   : > { %1255 = vperm.xlu1 %2475, %v1185_v34  }
  0xa1   : > { %1260 = vperm.xlu0 %2474, %v1186_v35  }
  0xa2   : > { %1265 = vperm.xlu1 %2475, %v1187_v36  }
  0xa5   : > { %1481 = vperm.xlu0 %2474, %v1471_v37  }
  0xa6   : > { %1486 = vperm.xlu1 %2475, %v1472_v38  }
  0xa9   : > { %1491 = vperm.xlu0 %2474, %v1473_v39  }
  0xaa   : > { %1496 = vperm.xlu1 %2475, %v1474_v40  }
  0xad   : > { %1501 = vperm.xlu0 %2474, %v1475_v41  }
  0xae   : > { %1506 = vperm.xlu1 %2475, %v1476_v42  }
  0xb1   : > { %1511 = vperm.xlu0 %2474, %v1477_v43  }
  0xb2   : > { %1516 = vperm.xlu1 %2475, %v1478_v44  }
  0xb5   : > { %1660 = vperm.xlu0 %2474, %v1654_v45  }
  0xb6   : > { %1665 = vperm.xlu1 %2475, %v1655_v46  }
  0xb9   : > { %1670 = vperm.xlu0 %2474, %v1656_v47  }
  0xba   : > { %1675 = vperm.xlu1 %2475, %v1657_v48  }
  0xbd   : > { %1793 = vperm.xlu0 %2474, %v1790_v49  }
  0xc4   : > { %v563_v50 = vpop.permute.xlu1 %562  ;;  %v3036_v51 = vpop.permute.xlu0 %642 }
  0xc8   : > { %v3041_v54 = vpop.permute.xlu0 %647 }
  0xc9   : > { %v568_v53 = vpop.permute.xlu1 %567 }
  0xcc   : > { %v3045_v56 = vpop.permute.xlu0 %652 }
  0xcd   : > { %v3043_v55 = vpop.permute.xlu1 %657 }
  0xd0   : > { %v573_v58 = vpop.permute.xlu0 %572 }
  0xd1   : > { %v578_v57 = vpop.permute.xlu1 %577 }
  0xd4   : > { %v3049_v60 = vpop.permute.xlu0 %662 }
  0xd5   : > { %v3047_v59 = vpop.permute.xlu1 %667 }
  0xd8   : > { %v583_v62 = vpop.permute.xlu0 %582 }
  0xd9   : > { %v588_v61 = vpop.permute.xlu1 %587 }
  0xdc   : > { %v3053_v0 = vpop.permute.xlu0 %672 }
  0xdd   : > { %v3051_v63 = vpop.permute.xlu1 %677 }
  0xe0   : > { %v593_v2 = vpop.permute.xlu0 %592 }
  0xe1   : > { %v598_v1 = vpop.permute.xlu1 %597 }
  0xe4   : > { %v3057_v4 = vpop.permute.xlu0 %682 }
  0xe5   : > { %v3055_v3 = vpop.permute.xlu1 %687 }
  0xe8   : > { %v603_v6 = vpop.permute.xlu0 %602 }
  0xe9   : > { %v608_v5 = vpop.permute.xlu1 %607 }
  0xec   : > { %v3061_v8 = vpop.permute.xlu0 %692 }
  0xed   : > { %v3059_v7 = vpop.permute.xlu1 %697 }
  0xf0   : > { %v613_v18 = vpop.permute.xlu0 %612 }
  0xf1   : > { %v618_v15 = vpop.permute.xlu1 %617 }
  0xf4   : > { %v3081_v34 = vpop.permute.xlu0 %702 }
  0xf5   : > { %v3077_v31 = vpop.permute.xlu1 %707 }
  0xf8   : > { %v623_v49 = vpop.permute.xlu0 %622 }
  0xf9   : > { %v628_v46 = vpop.permute.xlu1 %627 }
 0x12b   : > { %v2195_v9 = vpop.f32.mrb[0].mxu0 }
 0x12c   : > { %v889_v11 = vadd.f32 %v2195_v9, %v568_v53  ;;  %v883_v12 = vpop.f32.mrb[1].mxu0 }
 0x12d   : > { %v884_v13 = vadd.f32 %v883_v12, %v563_v50 }
 0x12e   : > { %v1077_v14 = vmul.f32 %v3063_v10, %v889_v11  ;;  %vm1043_vm1 = vcmp.gt.f32.partialorder %v889_v11, 0.0 }
 0x12f   : > { %v1076_v16 = vmul.f32 %v3063_v10, %v884_v13  ;;  %v2198_v17 = vpop.f32.mrb[2].mxu0  ;;  %vm1042_vm2 = vcmp.gt.f32.partialorder %v884_v13, 0.0 }
 0x130   : > { %v899_v19 = vadd.f32 %v2198_v17, %v578_v57  ;;  %v893_v20 = vpop.f32.mrb[3].mxu0  ;;  %v3067_v21 = vsel %vm1043_vm1, %v889_v11, %v1077_v14  ;;  %v3109_v14 = vpop.permute.xlu0 %712 }
 0x131   : > { %v894_v22 = vadd.f32 %v893_v20, %v573_v58  ;;  %v3069_v23 = vsel %vm1042_vm2, %v884_v13, %v1076_v16 }
 0x132   : > { %vm1045_vm3 = vcmp.gt.f32.partialorder %v899_v19, 0.0  ;;  %v1079_v24 = vmul.f32 %v3063_v10, %v899_v19  ;;  %v2336_v25 = vpack.c.bf16 %v3067_v21, %v3069_v23 }
 0x133   : > { %vm1044_vm4 = vcmp.gt.f32.partialorder %v894_v22, 0.0  ;;  %v1078_v26 = vmul.f32 %v3063_v10, %v894_v22  ;;  %v2201_v27 = vpop.f32.mrb[4].mxu0 }
 0x134   : > { %v909_v28 = vadd.f32 %v2201_v27, %v588_v61  ;;  %v903_v29 = vpop.f32.mrb[5].mxu0  ;;  %v3075_v30 = vsel %vm1045_vm3, %v899_v19, %v1079_v24 }
 0x135   : > { %v904_v32 = vadd.f32 %v903_v29, %v583_v62  ;;  %v3079_v33 = vsel %vm1044_vm4, %v894_v22, %v1078_v26 }
 0x136   : > { %vm1047_vm5 = vcmp.gt.f32.partialorder %v909_v28, 0.0  ;;  %v1081_v35 = vmul.f32 %v3063_v10, %v909_v28  ;;  %v2340_v36 = vpack.c.bf16 %v3075_v30, %v3079_v33 }
 0x137   : > { %vm1046_vm6 = vcmp.gt.f32.partialorder %v904_v32, 0.0  ;;  %v1080_v37 = vmul.f32 %v3063_v10, %v904_v32  ;;  %v2204_v38 = vpop.f32.mrb[6].mxu0 }
 0x138   : > { %v919_v39 = vadd.f32 %v2204_v38, %v598_v1  ;;  %v913_v40 = vpop.f32.mrb[7].mxu0  ;;  %v3087_v41 = vsel %vm1047_vm5, %v909_v28, %v1081_v35 }
 0x139   : > { %v914_v42 = vadd.f32 %v913_v40, %v593_v2  ;;  %v3089_v43 = vsel %vm1046_vm6, %v904_v32, %v1080_v37  ;;  %v633_v37 = vpop.permute.xlu0 %632 }
 0x13a   : > { %vm1049_vm7 = vcmp.gt.f32.partialorder %v919_v39, 0.0  ;;  %v1083_v44 = vmul.f32 %v3063_v10, %v919_v39  ;;  %v2344_v45 = vpack.c.bf16 %v3087_v41, %v3089_v43 }
 0x13b   : > { %vm1048_vm8 = vcmp.gt.f32.partialorder %v914_v42, 0.0  ;;  %v1082_v47 = vmul.f32 %v3063_v10, %v914_v42  ;;  %v2207_v48 = vpop.f32.mrb[8].mxu0 }
 0x13c   : > { %v929_v50 = vadd.f32 %v2207_v48, %v608_v5  ;;  %v923_v52 = vpop.f32.mrb[9].mxu0  ;;  %v3095_v53 = vsel %vm1049_vm7, %v919_v39, %v1083_v44  ;;  %v3105_v5 = vpop.permute.xlu1 %717 }
 0x13d   : > { %v924_v57 = vadd.f32 %v923_v52, %v603_v6  ;;  %v3097_v58 = vsel %vm1048_vm8, %v914_v42, %v1082_v47 }
 0x13e   : > { %vm1051_vm9 = vcmp.gt.f32.partialorder %v929_v50, 0.0  ;;  %v1085_v61 = vmul.f32 %v3063_v10, %v929_v50  ;;  %v2348_v62 = vpack.c.bf16 %v3095_v53, %v3097_v58 }
 0x13f   : > { %vm1050_vm10 = vcmp.gt.f32.partialorder %v924_v57, 0.0  ;;  %v1084_v1 = vmul.f32 %v3063_v10, %v924_v57  ;;  %v2210_v2 = vpop.f32.mrb[10].mxu0 }
 0x140   : > { %v939_v9 = vadd.f32 %v2210_v2, %v618_v15  ;;  %v933_v11 = vpop.f32.mrb[11].mxu0  ;;  %v3103_v12 = vsel %vm1051_vm9, %v929_v50, %v1085_v61  ;;  %v638_v29 = vpop.permute.xlu1 %637 }
 0x141   : > { %v934_v13 = vadd.f32 %v933_v11, %v613_v18  ;;  %v3107_v6 = vsel %vm1050_vm10, %v924_v57, %v1084_v1 }
 0x142   : > { %vm1053_vm11 = vcmp.gt.f32.partialorder %v939_v9, 0.0  ;;  %v1087_v16 = vmul.f32 %v3063_v10, %v939_v9  ;;  %v2352_v17 = vpack.c.bf16 %v3103_v12, %v3107_v6 }
 0x143   : > { %vm1052_vm12 = vcmp.gt.f32.partialorder %v934_v13, 0.0  ;;  %v1086_v19 = vmul.f32 %v3063_v10, %v934_v13  ;;  %v2213_v15 = vpop.f32.mrb[12].mxu0 }
 0x144   : > { %v949_v20 = vadd.f32 %v2213_v15, %v628_v46  ;;  %v943_v22 = vpop.f32.mrb[13].mxu0  ;;  %v3115_v24 = vsel %vm1053_vm11, %v939_v9, %v1087_v16 }
 0x145   : > { %v944_v26 = vadd.f32 %v943_v22, %v623_v49  ;;  %v3117_v18 = vsel %vm1052_vm12, %v934_v13, %v1086_v19 }
 0x146   : > { %vm1055_vm13 = vcmp.gt.f32.partialorder %v949_v20, 0.0  ;;  %v1089_v27 = vmul.f32 %v3063_v10, %v949_v20  ;;  %v2356_v28 = vpack.c.bf16 %v3115_v24, %v3117_v18  ;;  %v1140_v24 = vld [vmem:[%s3399_s3] sm:$0xff]  ;;  %v1142_v18 = vld [vmem:[%s3399_s3 + $0x10] sm:$0xff] }
 0x147   : > { %vm1054_vm14 = vcmp.gt.f32.partialorder %v944_v26, 0.0  ;;  %v1088_v32 = vmul.f32 %v3063_v10, %v944_v26  ;;  %v2216_v35 = vpop.f32.mrb[14].mxu0 }
 0x148   : > { %v959_v38 = vadd.f32 %v2216_v35, %v638_v29  ;;  %v953_v39 = vpop.f32.mrb[15].mxu0  ;;  %v3123_v40 = vsel %vm1055_vm13, %v949_v20, %v1089_v27 }
 0x149   : > { %v954_v42 = vadd.f32 %v953_v39, %v633_v37  ;;  %v3125_v44 = vsel %vm1054_vm14, %v944_v26, %v1088_v32 }
 0x14a   : > { %vm1057_vm15 = vcmp.gt.f32.partialorder %v959_v38, 0.0  ;;  %v1091_v46 = vmul.f32 %v3063_v10, %v959_v38  ;;  %v2360_v47 = vpack.c.bf16 %v3123_v40, %v3125_v44  ;;  %v1144_v40 = vld [vmem:[%s3399_s3 + $0x20] sm:$0xff]  ;;  %v1147_v44 = vld [vmem:[%s3399_s3 + $0x38] sm:$0xff] }
 0x14b   : > { %vm1056_vm1 = vcmp.gt.f32.partialorder %v954_v42, 0.0  ;;  %v1090_v48 = vmul.f32 %v3063_v10, %v954_v42  ;;  %v2219_v49 = vpop.f32.mrb[16].mxu0 }
 0x14c   : > { %v969_v50 = vadd.f32 %v2219_v49, %v3041_v54  ;;  %v963_v52 = vpop.f32.mrb[17].mxu0  ;;  %v3132_v57 = vsel %vm1057_vm15, %v959_v38, %v1091_v46 }
 0x14d   : > { %v964_v61 = vadd.f32 %v963_v52, %v3036_v51  ;;  %v3135_v1 = vsel %vm1056_vm1, %v954_v42, %v1090_v48 }
 0x14e   : > { %v1093_v2 = vmul.f32 %v3063_v10, %v969_v50  ;;  %vm1059_vm2 = vcmp.gt.f32.partialorder %v969_v50, 0.0  ;;  %v2364_v9 = vpack.c.bf16 %v3132_v57, %v3135_v1  ;;  %v1149_v57 = vld [vmem:[%s3399_s3 + $0x48] sm:$0xff]  ;;  %v1148_v1 = vld [vmem:[%s3399_s3 + $0x40] sm:$0xff] }
 0x14f   : > { %v1092_v11 = vmul.f32 %v3063_v10, %v964_v61  ;;  %v2222_v13 = vpop.f32.mrb[18].mxu0  ;;  %vm1058_vm3 = vcmp.gt.f32.partialorder %v964_v61, 0.0 }
 0x150   : > { %v979_v16 = vadd.f32 %v2222_v13, %v3043_v55  ;;  %v973_v54 = vpop.f32.mrb[19].mxu0  ;;  %v1125_v19 = vsel %vm1059_vm2, %v969_v50, %v1093_v2 }
 0x151   : > { %v974_v15 = vadd.f32 %v973_v54, %v3045_v56  ;;  %v1124_v20 = vsel %vm1058_vm3, %v964_v61, %v1092_v11 }
 0x152   : > { %vm1061_vm4 = vcmp.gt.f32.partialorder %v979_v16, 0.0  ;;  %v1095_v51 = vmul.f32 %v3063_v10, %v979_v16  ;;  %v2334_v22 = vpack.c.bf16 %v1125_v19, %v1124_v20 }
 0x153   : > { %vm1060_vm5 = vcmp.gt.f32.partialorder %v974_v15, 0.0  ;;  %v1094_v26 = vmul.f32 %v3063_v10, %v974_v15  ;;  %v2225_v27 = vpop.f32.mrb[20].mxu0 }
 0x154   : > { %v989_v29 = vadd.f32 %v2225_v27, %v3047_v59  ;;  %v983_v32 = vpop.f32.mrb[21].mxu0  ;;  %2335 = vmatprep.subr.bf16.mxu1 %v2334_v22  ;;  %v1127_v35 = vsel %vm1061_vm4, %v979_v16, %v1095_v51 }
 0x155   : > { %v984_v55 = vadd.f32 %v983_v32, %v3049_v60  ;;  %2337 = vmatpush3.bf16.msra.mxu1 %v2336_v25  ;;  %v1126_v56 = vsel %vm1060_vm5, %v974_v15, %v1094_v26 }
 0x156   : > { %vm1063_vm6 = vcmp.gt.f32.partialorder %v989_v29, 0.0  ;;  %v1097_v37 = vmul.f32 %v3063_v10, %v989_v29  ;;  %v2338_v38 = vpack.c.bf16 %v1127_v35, %v1126_v56  ;;  %v1150_v35 = vld [vmem:[%s3399_s3 + $0x50] sm:$0xff]  ;;  %v1152_v56 = vld [vmem:[%s3399_s3 + $0x60] sm:$0xff] }
 0x157   : > { %vm1062_vm7 = vcmp.gt.f32.partialorder %v984_v55, 0.0  ;;  %v1096_v39 = vmul.f32 %v3063_v10, %v984_v55  ;;  %v2228_v42 = vpop.f32.mrb[22].mxu0 }
 0x158   : > { %v999_v59 = vadd.f32 %v2228_v42, %v3051_v63  ;;  %v993_v46 = vpop.f32.mrb[23].mxu0  ;;  %2339 = vmatprep.subr.bf16.mxu1 %v2338_v38  ;;  %v1129_v48 = vsel %vm1063_vm6, %v989_v29, %v1097_v37  ;;  %v1155_v37 = vld [vmem:[%s3399_s3 + $0x78] sm:$0xff]  ;;  %v1154_v38 = vld [vmem:[%s3399_s3 + $0x70] sm:$0xff]  ;;  %v1156_v42 = vld [vmem:[%s3399_s3 + $0x80] sm:$0xff] }
 0x159   : > { %v994_v60 = vadd.f32 %v993_v46, %v3053_v0  ;;  %2341 = vmatpush3.bf16.msra.mxu1 %v2340_v36  ;;  %v1128_v21 = vsel %vm1062_vm7, %v984_v55, %v1096_v39  ;;  %v1153_v55 = vld [vmem:[%s3399_s3 + $0x68] sm:$0xff]  ;;  %v1158_v46 = vld [vmem:[%s3399_s3 + $0x90] sm:$0xff] }
 0x15a   : > { %vm1065_vm8 = vcmp.gt.f32.partialorder %v999_v59, 0.0  ;;  %v1099_v23 = vmul.f32 %v3063_v10, %v999_v59  ;;  %v2342_v25 = vpack.c.bf16 %v1129_v48, %v1128_v21  ;;  %v1157_v39 = vld [vmem:[%s3399_s3 + $0x88] sm:$0xff]  ;;  %v1163_v21 = vld [vmem:[%s3399_s3 + $0xb8] sm:$0xff] }
 0x15b   : > { %vm1064_vm9 = vcmp.gt.f32.partialorder %v994_v60, 0.0  ;;  %v1098_v49 = vmul.f32 %v3063_v10, %v994_v60  ;;  %v2231_v50 = vpop.f32.mrb[24].mxu0  ;;  %v1161_v48 = vld [vmem:[%s3399_s3 + $0xa8] sm:$0xff] }
 0x15c   : > { %v1009_v63 = vadd.f32 %v2231_v50, %v3055_v3  ;;  %v1003_v52 = vpop.f32.mrb[25].mxu0  ;;  %2343 = vmatprep.subr.bf16.mxu1 %v2342_v25  ;;  %v1131_v61 = vsel %vm1065_vm8, %v999_v59, %v1099_v23  ;;  %v1159_v59 = vld [vmem:[%s3399_s3 + $0x98] sm:$0xff]  ;;  %v1162_v23 = vld [vmem:[%s3399_s3 + $0xb0] sm:$0xff]  ;;  %v1165_v25 = vld [vmem:[%s3399_s3 + $0xc8] sm:$0xff] }
 0x15d   : > { %v1004_v0 = vadd.f32 %v1003_v52, %v3057_v4  ;;  %2345 = vmatpush3.bf16.msra.mxu1 %v2344_v45  ;;  %v1130_v30 = vsel %vm1064_vm9, %v994_v60, %v1098_v49  ;;  %v1160_v60 = vld [vmem:[%s3399_s3 + $0xa0] sm:$0xff]  ;;  %v1167_v50 = vld [vmem:[%s3399_s3 + $0xd8] sm:$0xff]  ;;  %v1169_v52 = vld [vmem:[%s3399_s3 + $0xe8] sm:$0xff] }
 0x15e   : > { %vm1067_vm10 = vcmp.gt.f32.partialorder %v1009_v63, 0.0  ;;  %v1101_v33 = vmul.f32 %v3063_v10, %v1009_v63  ;;  %v2346_v36 = vpack.c.bf16 %v1131_v61, %v1130_v30  ;;  %v1164_v49 = vld [vmem:[%s3399_s3 + $0xc0] sm:$0xff]  ;;  %v1170_v30 = vld [vmem:[%s3399_s3 + $0xf0] sm:$0xff] }
 0x15f   : > { %vm1066_vm11 = vcmp.gt.f32.partialorder %v1004_v0, 0.0  ;;  %v1100_v2 = vmul.f32 %v3063_v10, %v1004_v0  ;;  %v2234_v11 = vpop.f32.mrb[26].mxu0  ;;  %v1168_v61 = vld [vmem:[%s3399_s3 + $0xe0] sm:$0xff] }
 0x160   : > { %v1019_v3 = vadd.f32 %v2234_v11, %v3059_v7  ;;  %v1013_v13 = vpop.f32.mrb[27].mxu0  ;;  %2347 = vmatprep.subr.bf16.mxu1 %v2346_v36  ;;  %v1133_v16 = vsel %vm1067_vm10, %v1009_v63, %v1101_v33  ;;  %v1166_v63 = vld [vmem:[%s3399_s3 + $0xd0] sm:$0xff]  ;;  %v1463_v33 = vld [vmem:[%s3401_s5] sm:$0xff] }
 0x161   : > { %v1014_v4 = vadd.f32 %v1013_v13, %v3061_v8  ;;  %2349 = vmatpush3.bf16.msra.mxu1 %v2348_v62  ;;  %v1132_v41 = vsel %vm1066_vm11, %v1004_v0, %v1100_v2  ;;  %v1171_v0 = vld [vmem:[%s3399_s3 + $0xf8] sm:$0xff]  ;;  %2273 = vmatprep.mubr.f32.mxu0 %v1463_v33 }
 0x162   : > { %vm1069_vm12 = vcmp.gt.f32.partialorder %v1019_v3, 0.0  ;;  %v1103_v43 = vmul.f32 %v3063_v10, %v1019_v3  ;;  %v2350_v45 = vpack.c.bf16 %v1133_v16, %v1132_v41 }
 0x163   : > { %vm1068_vm13 = vcmp.gt.f32.partialorder %v1014_v4, 0.0  ;;  %v1102_v54 = vmul.f32 %v3063_v10, %v1014_v4  ;;  %v2237_v19 = vpop.f32.mrb[28].mxu0 }
 0x164   : > { %v1029_v7 = vadd.f32 %v2237_v19, %v3077_v31  ;;  %v1023_v15 = vpop.f32.mrb[29].mxu0  ;;  %2351 = vmatprep.subr.bf16.mxu1 %v2350_v45  ;;  %v1135_v20 = vsel %vm1069_vm12, %v1019_v3, %v1103_v43  ;;  %v1191_v3 = vpop.permute.xlu0 %1190 }
 0x165   : > { %v1024_v8 = vadd.f32 %v1023_v15, %v3081_v34  ;;  %2353 = vmatpush3.bf16.msra.mxu1 %v2352_v17  ;;  %v1134_v53 = vsel %vm1068_vm13, %v1014_v4, %v1102_v54  ;;  %v3289_v4 = vstv %s2004_s19  ;;  %v1196_v45 = vpop.permute.xlu1 %1195 }
 0x166   : > { %vm1071_vm14 = vcmp.gt.f32.partialorder %v1029_v7, 0.0  ;;  %v1105_v58 = vmul.f32 %v3063_v10, %v1029_v7  ;;  %v2354_v62 = vpack.c.bf16 %v1135_v20, %v1134_v53 }
 0x167   : > { %vm1070_vm15 = vcmp.gt.f32.partialorder %v1024_v8, 0.0  ;;  %v1104_v51 = vmul.f32 %v3063_v10, %v1024_v8  ;;  %v2240_v22 = vpop.f32.mrb[30].mxu0 }
 0x168   : > { %v1039_v31 = vadd.f32 %v2240_v22, %v3105_v5  ;;  %v1033_v26 = vpop.f32.mrb[31].mxu0  ;;  %2355 = vmatprep.subr.bf16.mxu1 %v2354_v62  ;;  %v1137_v27 = vsel %vm1071_vm14, %v1029_v7, %v1105_v58  ;;  %v1201_v53 = vpop.permute.xlu0 %1200 }
 0x169   : > { %v1034_v34 = vadd.f32 %v1033_v26, %v3109_v14  ;;  %2357 = vmatpush3.bf16.msra.mxu1 %v2356_v28  ;;  %v1136_v12 = vsel %vm1070_vm15, %v1024_v8, %v1104_v51  ;;  %v1145_v28 = vld [vmem:[%s3399_s3 + $0x28] sm:$0xff] }
 0x16a   : > { %vm1073_vm1 = vcmp.gt.f32.partialorder %v1039_v31, 0.0  ;;  %v1107_v6 = vmul.f32 %v3063_v10, %v1039_v31  ;;  %v2358_v17 = vpack.c.bf16 %v1137_v27, %v1136_v12 }
 0x16b   : > { %vm1072_vm2 = vcmp.gt.f32.partialorder %v1034_v34, 0.0  ;;  %v1106_v29 = vmul.f32 %v3063_v10, %v1034_v34  ;;  %v1143_v10 = vld [vmem:[%s3399_s3 + $0x18] sm:$0xff] }
 0x16c   : > { %2359 = vmatprep.subr.bf16.mxu1 %v2358_v17  ;;  %v1139_v32 = vsel %vm1073_vm1, %v1039_v31, %v1107_v6 }
 0x16d   : > { %2361 = vmatpush3.bf16.msra.mxu1 %v2360_v47  ;;  %v1138_v5 = vsel %vm1072_vm2, %v1034_v34, %v1106_v29  ;;  %v1146_v47 = vld [vmem:[%s3399_s3 + $0x30] sm:$0xff]  ;;  %v1206_v34 = vpop.permute.xlu1 %1205 }
 0x16e   : > { %v2362_v14 = vpack.c.bf16 %v1139_v32, %v1138_v5 }
 0x170   : > { %2363 = vmatprep.subr.bf16.mxu1 %v2362_v14  ;;  %v1211_v14 = vpop.permute.xlu0 %1210 }
 0x171   : > { %2365 = vmatpush3.bf16.msra.mxu1 %v2364_v9  ;;  %v1151_v9 = vld [vmem:[%s3399_s3 + $0x58] sm:$0xff] }
 0x174   : > { %1333 = vmatmul.mubr.f32.vlgmr.msra.gmra.mrb[0].mxu1 %v1140_v24 }
 0x175   : > { %1337 = vmatprep.mubr.f32.mxu1 %v1143_v10 }
 0x178   : > { %1338 = vmatmul.mubr.f32.gmra.mrb[2].mxu1 %v1142_v18 }
 0x179   : > { %1342 = vmatprep.mubr.f32.mxu1 %v1145_v28 }
 0x17c   : > { %1343 = vmatmul.mubr.f32.gmra.mrb[4].mxu1 %v1144_v40 }
 0x17d   : > { %1347 = vmatprep.mubr.f32.mxu1 %v1147_v44 }
 0x180   : > { %1348 = vmatmul.mubr.f32.gmra.mrb[6].mxu1 %v1146_v47 }
 0x181   : > { %1352 = vmatprep.mubr.f32.mxu1 %v1149_v57  ;;  %v1216_v57 = vpop.permute.xlu1 %1215 }
 0x184   : > { %1353 = vmatmul.mubr.f32.gmra.mrb[8].mxu1 %v1148_v1 }
 0x185   : > { %1357 = vmatprep.mubr.f32.mxu1 %v1151_v9 }
 0x188   : > { %1358 = vmatmul.mubr.f32.gmra.mrb[10].mxu1 %v1150_v35 }
 0x189   : > { %1362 = vmatprep.mubr.f32.mxu1 %v1153_v55 }
 0x18c   : > { %1363 = vmatmul.mubr.f32.gmra.mrb[12].mxu1 %v1152_v56 }
 0x18d   : > { %1367 = vmatprep.mubr.f32.mxu1 %v1155_v37 }
 0x190   : > { %1368 = vmatmul.mubr.f32.gmra.mrb[14].mxu1 %v1154_v38  ;;  %v1221_v38 = vpop.permute.xlu0 %1220 }
 0x191   : > { %1372 = vmatprep.mubr.f32.mxu1 %v1157_v39 }
 0x194   : > { %1373 = vmatmul.mubr.f32.gmra.mrb[16].mxu1 %v1156_v42 }
 0x195   : > { %1377 = vmatprep.mubr.f32.mxu1 %v1159_v59 }
 0x198   : > { %1378 = vmatmul.mubr.f32.gmra.mrb[18].mxu1 %v1158_v46 }
 0x199   : > { %1382 = vmatprep.mubr.f32.mxu1 %v1161_v48 }
 0x19c   : > { %1383 = vmatmul.mubr.f32.gmra.mrb[20].mxu1 %v1160_v60 }
 0x19d   : > { %1387 = vmatprep.mubr.f32.mxu1 %v1163_v21 }
 0x1a0   : > { %1388 = vmatmul.mubr.f32.gmra.mrb[22].mxu1 %v1162_v23  ;;  %v1226_v23 = vpop.permute.xlu1 %1225 }
 0x1a1   : > { %1392 = vmatprep.mubr.f32.mxu1 %v1165_v25 }
 0x1a4   : > { %1393 = vmatmul.mubr.f32.gmra.mrb[24].mxu1 %v1164_v49 }
 0x1a5   : > { %1397 = vmatprep.mubr.f32.mxu1 %v1167_v50 }
 0x1a8   : > { %1398 = vmatmul.mubr.f32.gmra.mrb[26].mxu1 %v1166_v63 }
 0x1a9   : > { %1402 = vmatprep.mubr.f32.mxu1 %v1169_v52 }
 0x1ac   : > { %1403 = vmatmul.mubr.f32.gmra.mrb[28].mxu1 %v1168_v61 }
 0x1ad   : > { %1407 = vmatprep.mubr.f32.mxu1 %v1171_v0  ;;  %v1231_v0 = vpop.permute.xlu0 %1230 }
 0x1b0   : > { %1408 = vmatmul.mubr.f32.gmra.mrb[30].mxu1 %v1170_v30 }
 0x247   : > { %v2088_v36 = vpop.f32.mrb[0].mxu1 }
 0x248   : > { %v2089_v2 = vpop.f32.mrb[1].mxu1 }
 0x249   : > { %v2090_v11 = vadd.f32 %v2089_v2, %v2088_v36 }
 0x24b   : > { %v1335_v13 = vadd.f32 %v2090_v11, %v1191_v3  ;;  %v2091_v16 = vpop.f32.mrb[2].mxu1 }
 0x24c   : > { %v2092_v41 = vpop.f32.mrb[3].mxu1 }
 0x24d   : > { %v2093_v43 = vadd.f32 %v2092_v41, %v2091_v16  ;;  %v1431_v54 = vmul.f32 %v3289_v4, %v1335_v13  ;;  %vm1413_vm3 = vcmp.gt.f32.partialorder %v1335_v13, 0.0  ;;  %v1236_v16 = vpop.permute.xlu1 %1235 }
 0x24f   : > { %v1340_v19 = vadd.f32 %v2093_v43, %v1196_v45  ;;  %v2094_v7 = vpop.f32.mrb[4].mxu1  ;;  %v1447_v51 = vsel %vm1413_vm3, %v1335_v13, %v1431_v54 }
 0x250   : > { %v2095_v15 = vpop.f32.mrb[5].mxu1 }
 0x251   : > { %vm1414_vm4 = vcmp.gt.f32.partialorder %v1340_v19, 0.0  ;;  %v1432_v20 = vmul.f32 %v3289_v4, %v1340_v19  ;;  %v2096_v8 = vadd.f32 %v2095_v15, %v2094_v7  ;;  %v1241_v15 = vpop.permute.xlu0 %1240 }
 0x253   : > { %v1345_v58 = vadd.f32 %v2096_v8, %v1201_v53  ;;  %v2097_v62 = vpop.f32.mrb[6].mxu1  ;;  %v1448_v22 = vsel %vm1414_vm4, %v1340_v19, %v1432_v20 }
 0x254   : > { %v2098_v31 = vpop.f32.mrb[7].mxu1  ;;  %v2366_v26 = vpack.c.bf16 %v1448_v22, %v1447_v51 }
 0x255   : > { %v2099_v27 = vadd.f32 %v2098_v31, %v2097_v62  ;;  %v1433_v12 = vmul.f32 %v3289_v4, %v1345_v58  ;;  %vm1415_vm5 = vcmp.gt.f32.partialorder %v1345_v58, 0.0  ;;  %v1246_v31 = vpop.permute.xlu1 %1245 }
 0x256   : > { %2367 = vmatprep.subr.bf16.mxu0 %v2366_v26 }
 0x257   : > { %v1350_v6 = vadd.f32 %v2099_v27, %v1206_v34  ;;  %v2100_v17 = vpop.f32.mrb[8].mxu1  ;;  %2369 = vmatpush3.bf16.msra.mxu0 %v2366_v26  ;;  %v1449_v18 = vsel %vm1415_vm5, %v1345_v58, %v1433_v12 }
 0x258   : > { %v2101_v29 = vpop.f32.mrb[9].mxu1 }
 0x259   : > { %vm1416_vm6 = vcmp.gt.f32.partialorder %v1350_v6, 0.0  ;;  %v1434_v32 = vmul.f32 %v3289_v4, %v1350_v6  ;;  %v2102_v5 = vadd.f32 %v2101_v29, %v2100_v17  ;;  %v1251_v29 = vpop.permute.xlu0 %1250 }
 0x25b   : > { %v1355_v24 = vadd.f32 %v2102_v5, %v1211_v14  ;;  %v2103_v10 = vpop.f32.mrb[10].mxu1  ;;  %v1450_v28 = vsel %vm1416_vm6, %v1350_v6, %v1434_v32 }
 0x25c   : > { %v2104_v40 = vpop.f32.mrb[11].mxu1  ;;  %v2370_v44 = vpack.c.bf16 %v1450_v28, %v1449_v18 }
 0x25d   : > { %v2105_v47 = vadd.f32 %v2104_v40, %v2103_v10  ;;  %v1435_v1 = vmul.f32 %v3289_v4, %v1355_v24  ;;  %vm1417_vm7 = vcmp.gt.f32.partialorder %v1355_v24, 0.0  ;;  %v1256_v40 = vpop.permute.xlu1 %1255 }
 0x25e   : > { %2371 = vmatprep.subr.bf16.mxu0 %v2370_v44 }
 0x25f   : > { %v1360_v9 = vadd.f32 %v2105_v47, %v1216_v57  ;;  %v2106_v35 = vpop.f32.mrb[12].mxu1  ;;  %2373 = vmatpush3.bf16.msra.mxu0 %v2370_v44  ;;  %v1451_v59 = vsel %vm1417_vm7, %v1355_v24, %v1435_v1 }
 0x260   : > { %v2107_v55 = vpop.f32.mrb[13].mxu1 }
 0x261   : > { %vm1418_vm8 = vcmp.gt.f32.partialorder %v1360_v9, 0.0  ;;  %v1436_v56 = vmul.f32 %v3289_v4, %v1360_v9  ;;  %v2108_v37 = vadd.f32 %v2107_v55, %v2106_v35  ;;  %v1261_v55 = vpop.permute.xlu0 %1260 }
 0x263   : > { %v1365_v39 = vadd.f32 %v2108_v37, %v1221_v38  ;;  %v2109_v42 = vpop.f32.mrb[14].mxu1  ;;  %v1452_v46 = vsel %vm1418_vm8, %v1360_v9, %v1436_v56 }
 0x264   : > { %v2110_v48 = vpop.f32.mrb[15].mxu1  ;;  %v2374_v60 = vpack.c.bf16 %v1452_v46, %v1451_v59 }
 0x265   : > { %v2111_v21 = vadd.f32 %v2110_v48, %v2109_v42  ;;  %v1437_v25 = vmul.f32 %v3289_v4, %v1365_v39  ;;  %vm1419_vm9 = vcmp.gt.f32.partialorder %v1365_v39, 0.0  ;;  %v1266_v48 = vpop.permute.xlu1 %1265 }
 0x266   : > { %2375 = vmatprep.subr.bf16.mxu0 %v2374_v60 }
 0x267   : > { %v1370_v49 = vadd.f32 %v2111_v21, %v1226_v23  ;;  %v2112_v50 = vpop.f32.mrb[16].mxu1  ;;  %2377 = vmatpush3.bf16.msra.mxu0 %v2374_v60  ;;  %v1453_v36 = vsel %vm1419_vm9, %v1365_v39, %v1437_v25 }
 0x268   : > { %v2113_v63 = vpop.f32.mrb[17].mxu1 }
 0x269   : > { %vm1420_vm10 = vcmp.gt.f32.partialorder %v1370_v49, 0.0  ;;  %v1438_v52 = vmul.f32 %v3289_v4, %v1370_v49  ;;  %v2114_v61 = vadd.f32 %v2113_v63, %v2112_v50  ;;  %v1464_v63 = vld [vmem:[%s3401_s5 + $0x8] sm:$0xff] }
 0x26b   : > { %v1375_v30 = vadd.f32 %v2114_v61, %v1231_v0  ;;  %v2115_v33 = vpop.f32.mrb[18].mxu1  ;;  %v1454_v2 = vsel %vm1420_vm10, %v1370_v49, %v1438_v52  ;;  %v1465_v52 = vld [vmem:[%s3401_s5 + $0x10] sm:$0xff]  ;;  %v1466_v61 = vld [vmem:[%s3401_s5 + $0x18] sm:$0xff]  ;;  %v1468_v0 = vld [vmem:[%s3401_s5 + $0x28] sm:$0xff] }
 0x26c   : > { %v2116_v11 = vpop.f32.mrb[19].mxu1  ;;  %v2378_v3 = vpack.c.bf16 %v1454_v2, %v1453_v36  ;;  %v1650_v36 = vld [vmem:[%s3403_s7] sm:$0xff]  ;;  %v1487_v2 = vpop.permute.xlu1 %1486 }
 0x26d   : > { %v2117_v13 = vadd.f32 %v2116_v11, %v2115_v33  ;;  %v1439_v41 = vmul.f32 %v3289_v4, %v1375_v30  ;;  %vm1421_vm11 = vcmp.gt.f32.partialorder %v1375_v30, 0.0  ;;  %v1470_v33 = vld [vmem:[%s3401_s5 + $0x38] sm:$0xff]  ;;  %v1482_v11 = vpop.permute.xlu0 %1481 }
 0x26e   : > { %2379 = vmatprep.subr.bf16.mxu0 %v2378_v3 }
 0x26f   : > { %v1380_v43 = vadd.f32 %v2117_v13, %v1236_v16  ;;  %v2118_v45 = vpop.f32.mrb[20].mxu1  ;;  %2381 = vmatpush3.bf16.msra.mxu0 %v2378_v3  ;;  %v1455_v53 = vsel %vm1421_vm11, %v1375_v30, %v1439_v41  ;;  %v1469_v30 = vld [vmem:[%s3401_s5 + $0x30] sm:$0xff]  ;;  %v1633_v16 = vstv %s2005_s28  ;;  %s1971_s28 = sshll.u32 %s2708_s13, 3 }
 0x270   : > { %v2119_v54 = vpop.f32.mrb[21].mxu1  ;;  %v1497_v3 = vpop.permute.xlu1 %1496  ;;  %s487_s20 = scalar_lea.vmem [#allocation6], %s1971_s28  ;;  %s2497_s28 = scalar_lea.vmem %s2496_s17, 256 }
 0x271   : > { %vm1422_vm12 = vcmp.gt.f32.partialorder %v1380_v43, 0.0  ;;  %v1440_v19 = vmul.f32 %v3289_v4, %v1380_v43  ;;  %v2120_v7 = vadd.f32 %v2119_v54, %v2118_v45  ;;  %v1492_v41 = vpop.permute.xlu0 %1491  ;;  %s1885_s19 = sshll.u32 %s487_s20, 4  ;;  %s3354_s19 = int_to_ptr.vmem [resolvable:$true] %s1885_s19 }
 0x272   : > { %s2491_s16 = scalar_lea.vmem %s3354_s19, 128  ;;  %p2498_p13 = scmp.lt.s32.totalorder %s3354_s19, %s2496_s17 }
 0x273   : > { %v1385_v20 = vadd.f32 %v2120_v7, %v1241_v15  ;;  %v2121_v8 = vpop.f32.mrb[22].mxu1  ;;  %v1456_v58 = vsel %vm1422_vm12, %v1380_v43, %v1440_v19  ;;  %vm2562_vm12 = vmmov 0   ;;  %p2492_p5 = scmp.ne.s32.totalorder %s3354_s19, %s2491_s16  ;;  %p2499_p0 = scmp.lt.s32.totalorder %s2497_s28, %s2491_s16 }
 0x274   : > { %v2122_v62 = vpop.f32.mrb[23].mxu1  ;;  %v2382_v51 = vpack.c.bf16 %v1456_v58, %v1455_v53  ;;  %v1507_v58 = vpop.permute.xlu1 %1506 }
 0x275   : > { %v2123_v22 = vadd.f32 %v2122_v62, %v2121_v8  ;;  %v1441_v26 = vmul.f32 %v3289_v4, %v1385_v20  ;;  %vm1423_vm13 = vcmp.gt.f32.partialorder %v1385_v20, 0.0  ;;  %p2493_p11 = pnand %p2492_p5, %p3418_p10  ;;  %p2500_p1 = por %p2499_p0, %p2498_p13 }
 0x276   : > { %2383 = vmatprep.subr.bf16.mxu0 %v2382_v51 }
 0x277   : > { %v1390_v27 = vadd.f32 %v2123_v22, %v1246_v31  ;;  %v2124_v34 = vpop.f32.mrb[24].mxu1  ;;  %2385 = vmatpush3.bf16.msra.mxu0 %v2382_v51  ;;  %v1457_v14 = vsel %vm1423_vm13, %v1385_v20, %v1441_v26  ;;  %v1502_v22 = vpop.permute.xlu0 %1501  ;;  %p2494_p12 = pneg %p2493_p11 }
 0x278   : > { %v2125_v12 = vpop.f32.mrb[25].mxu1 }
 0x279   : > { %vm1424_vm14 = vcmp.gt.f32.partialorder %v1390_v27, 0.0  ;;  %v1442_v6 = vmul.f32 %v3289_v4, %v1390_v27  ;;  %v2126_v17 = vadd.f32 %v2125_v12, %v2124_v34  ;;  %p2501_p2 = pnand %p2500_p1, %p2494_p12 }
 0x27b   : > { %v1395_v32 = vadd.f32 %v2126_v17, %v1251_v29  ;;  %v2127_v5 = vpop.f32.mrb[26].mxu1  ;;  %v1458_v24 = vsel %vm1424_vm14, %v1390_v27, %v1442_v6 }
 0x27c   : > { %v2128_v10 = vpop.f32.mrb[27].mxu1  ;;  %v2386_v18 = vpack.c.bf16 %v1458_v24, %v1457_v14  ;;  %v1517_v24 = vpop.permute.xlu1 %1516 }
 0x27d   : > { %v2129_v28 = vadd.f32 %v2128_v10, %v2127_v5  ;;  %v1443_v44 = vmul.f32 %v3289_v4, %v1395_v32  ;;  %vm1425_vm15 = vcmp.gt.f32.partialorder %v1395_v32, 0.0 }
 0x27e   : > { %2387 = vmatprep.subr.bf16.mxu0 %v2386_v18 }
 0x27f   : > { %v1400_v47 = vadd.f32 %v2129_v28, %v1256_v40  ;;  %v2130_v57 = vpop.f32.mrb[28].mxu1  ;;  %2389 = vmatpush3.bf16.msra.mxu0 %v2386_v18  ;;  %v1459_v38 = vsel %vm1425_vm15, %v1395_v32, %v1443_v44  ;;  %v1512_v28 = vpop.permute.xlu0 %1511 }
 0x280   : > { %v2131_v1 = vpop.f32.mrb[29].mxu1 }
 0x281   : > { %vm1426_vm1 = vcmp.gt.f32.partialorder %v1400_v47, 0.0  ;;  %v1444_v9 = vmul.f32 %v3289_v4, %v1400_v47  ;;  %v2132_v35 = vadd.f32 %v2131_v1, %v2130_v57 }
 0x283   : > { %v1405_v56 = vadd.f32 %v2132_v35, %v1261_v55  ;;  %v2133_v37 = vpop.f32.mrb[30].mxu1  ;;  %v1460_v39 = vsel %vm1426_vm1, %v1400_v47, %v1444_v9  ;;  %vm1796_vm1 = vcmask 261120  }
 0x284   : > { %v2134_v42 = vpop.f32.mrb[31].mxu1  ;;  %v2390_v59 = vpack.c.bf16 %v1460_v39, %v1459_v38  ;;  %v1651_v39 = vld [vmem:[%s3403_s7 + $0x8] sm:$0xff] }
 0x285   : > { %v2135_v46 = vadd.f32 %v2134_v42, %v2133_v37  ;;  %v1445_v60 = vmul.f32 %v3289_v4, %v1405_v56  ;;  %vm1427_vm2 = vcmp.gt.f32.partialorder %v1405_v56, 0.0  ;;  %v1652_v42 = vld [vmem:[%s3403_s7 + $0x10] sm:$0xff] }
 0x286   : > { %2391 = vmatprep.subr.bf16.mxu0 %v2390_v59 }
 0x287   : > { %v1410_v21 = vadd.f32 %v2135_v46, %v1266_v48  ;;  %2393 = vmatpush3.bf16.msra.mxu0 %v2390_v59  ;;  %v1461_v25 = vsel %vm1427_vm2, %v1405_v56, %v1445_v60  ;;  %v1653_v59 = vld [vmem:[%s3403_s7 + $0x18] sm:$0xff]  ;;  %v2561_v46 = vmov 0.0|0.0   ;;  %v2563_v48 = vmov 0.0   ;;  %v1666_v60 = vpop.permute.xlu1 %1665 }
 0x288   : > { %2414 = vmatprep.subr.bf16.mxu1 %v2561_v46  ;;  %2315 = vmatprep.mubr.msk.f32.mxu1 %vm2562_vm12, %v2563_v48 }
 0x289   : > { %vm1428_vm3 = vcmp.gt.f32.partialorder %v1410_v21, 0.0  ;;  %v1446_v23 = vmul.f32 %v3289_v4, %v1410_v21  ;;  %v1467_v4 = vld [vmem:[%s3401_s5 + $0x20] sm:$0xff] }
 0x28b   : > { %v1462_v49 = vsel %vm1428_vm3, %v1410_v21, %v1446_v23  ;;  %v1661_v21 = vpop.permute.xlu0 %1660 }
 0x28c   : > { %v2394_v50 = vpack.c.bf16 %v1462_v49, %v1461_v25  ;;  %v1780_v25 = vstv %s2010_s29  ;;  %s1872_s29 = scalar_lea.sflag [#allocation4], %s2708_s13 }
 0x28e   : > { %2395 = vmatprep.subr.bf16.mxu0 %v2394_v50 }
 0x28f   : > { %2397 = vmatpush3.bf16.msra.mxu0 %v2394_v50 }
 0x292   : > { %2274 = vmatmul.mubr.f32.vlgmr.msra.gmra.mrb[32].mxu0 %v1464_v63 }
 0x293   : > { %2276 = vmatprep.mubr.f32.mxu0 %v1465_v52 }
 0x296   : > { %2277 = vmatmul.mubr.f32.gmra.mrb[34].mxu0 %v1466_v61  ;;  %v1676_v61 = vpop.permute.xlu1 %1675 }
 0x297   : > { %2279 = vmatprep.mubr.f32.mxu0 %v1467_v4 }
 0x29a   : > { %2280 = vmatmul.mubr.f32.gmra.mrb[36].mxu0 %v1468_v0 }
 0x29b   : > { %2282 = vmatprep.mubr.f32.mxu0 %v1469_v30  ;;  %v1671_v30 = vpop.permute.xlu0 %1670 }
 0x29e   : > { %2283 = vmatmul.mubr.f32.gmra.mrb[38].mxu0 %v1470_v33 }
 0x29f   : > { %2301 = vmatprep.mubr.msk.f32.mxu0 %vm720_vm0, %v1650_v36 }
 0x365   : > { %v2275_v13 = vpop.f32.mrb[32].mxu0 }
 0x366   : > { %v1591_v43 = vadd.f32 %v2275_v13, %v1487_v2  ;;  %v1585_v45 = vpop.f32.mrb[33].mxu0 }
 0x367   : > { %v1586_v54 = vadd.f32 %v1585_v45, %v1482_v11 }
 0x368   : > { %vm1625_vm4 = vcmp.gt.f32.partialorder %v1591_v43, 0.0  ;;  %v1635_v19 = vmul.f32 %v1633_v16, %v1591_v43 }
 0x369   : > { %vm1624_vm5 = vcmp.gt.f32.partialorder %v1586_v54, 0.0  ;;  %v1634_v7 = vmul.f32 %v1633_v16, %v1586_v54  ;;  %v2278_v15 = vpop.f32.mrb[34].mxu0 }
 0x36a   : > { %v1601_v20 = vadd.f32 %v2278_v15, %v1497_v3  ;;  %v1595_v8 = vpop.f32.mrb[35].mxu0  ;;  %v1643_v53 = vsel %vm1625_vm4, %v1591_v43, %v1635_v19  ;;  %v1789_v19 = vld [vmem:[%s3405_s9] sm:$0xff] }
 0x36b   : > { %v1596_v62 = vadd.f32 %v1595_v8, %v1492_v41  ;;  %v1642_v51 = vsel %vm1624_vm5, %v1586_v54, %v1634_v7  ;;  %v1794_v7 = vpop.permute.xlu0 %1793 }
 0x36c   : > { %vm1627_vm6 = vcmp.gt.f32.partialorder %v1601_v20, 0.0  ;;  %v1637_v31 = vmul.f32 %v1633_v16, %v1601_v20  ;;  %v2398_v26 = vpack.c.bf16 %v1643_v53, %v1642_v51 }
 0x36d   : > { %vm1626_vm7 = vcmp.gt.f32.partialorder %v1596_v62, 0.0  ;;  %v1636_v27 = vmul.f32 %v1633_v16, %v1596_v62  ;;  %v2281_v34 = vpop.f32.mrb[36].mxu0 }
 0x36e   : > { %v1611_v12 = vadd.f32 %v2281_v34, %v1507_v58  ;;  %v1605_v6 = vpop.f32.mrb[37].mxu0  ;;  %2399 = vmatprep.subr.bf16.mxu0 %v2398_v26  ;;  %v1645_v17 = vsel %vm1627_vm6, %v1601_v20, %v1637_v31 }
 0x36f   : > { %v1606_v29 = vadd.f32 %v1605_v6, %v1502_v22  ;;  %2401 = vmatpush3.bf16.msra.mxu0 %v2398_v26  ;;  %v1644_v32 = vsel %vm1626_vm7, %v1596_v62, %v1636_v27 }
 0x370   : > { %vm1629_vm8 = vcmp.gt.f32.partialorder %v1611_v12, 0.0  ;;  %v1639_v5 = vmul.f32 %v1633_v16, %v1611_v12  ;;  %v2402_v14 = vpack.c.bf16 %v1645_v17, %v1644_v32 }
 0x371   : > { %vm1628_vm9 = vcmp.gt.f32.partialorder %v1606_v29, 0.0  ;;  %v1638_v10 = vmul.f32 %v1633_v16, %v1606_v29  ;;  %v2284_v18 = vpop.f32.mrb[38].mxu0 }
 0x372   : > { %v1621_v40 = vadd.f32 %v2284_v18, %v1517_v24  ;;  %v1615_v44 = vpop.f32.mrb[39].mxu0  ;;  %2403 = vmatprep.subr.bf16.mxu0 %v2402_v14  ;;  %v1647_v47 = vsel %vm1629_vm8, %v1611_v12, %v1639_v5 }
 0x373   : > { %v1616_v57 = vadd.f32 %v1615_v44, %v1512_v28  ;;  %2405 = vmatpush3.bf16.msra.mxu0 %v2402_v14  ;;  %v1646_v1 = vsel %vm1628_vm9, %v1606_v29, %v1638_v10 }
 0x374   : > { %vm1631_vm10 = vcmp.gt.f32.partialorder %v1621_v40, 0.0  ;;  %v1641_v9 = vmul.f32 %v1633_v16, %v1621_v40  ;;  %v2406_v35 = vpack.c.bf16 %v1647_v47, %v1646_v1 }
 0x375   : > { %vm1630_vm11 = vcmp.gt.f32.partialorder %v1616_v57, 0.0  ;;  %v1640_v55 = vmul.f32 %v1633_v16, %v1616_v57 }
 0x376   : > { %2407 = vmatprep.subr.bf16.mxu0 %v2406_v35  ;;  %v1649_v56 = vsel %vm1631_vm10, %v1621_v40, %v1641_v9 }
 0x377   : > { %2409 = vmatpush3.bf16.msra.mxu0 %v2406_v35  ;;  %v1648_v37 = vsel %vm1630_vm11, %v1616_v57, %v1640_v55 }
 0x378   : > { %v2410_v38 = vpack.c.bf16 %v1649_v56, %v1648_v37 }
 0x37a   : > { %2411 = vmatprep.subr.bf16.mxu0 %v2410_v38 }
 0x37b   : > { %2413 = vmatpush3.bf16.msra.mxu0 %v2410_v38 }
 0x37e   : > { %2302 = vmatmul.mubr.msk.f32.vlgmr.msra.gmra.mrb[40].mxu0 %vm720_vm0, %v1651_v39 }
 0x37f   : > { %2304 = vmatprep.mubr.msk.f32.mxu0 %vm720_vm0, %v1652_v42 }
 0x382   : > { %2305 = vmatmul.mubr.msk.f32.gmra.mrb[42].mxu0 %vm720_vm0, %v1653_v59 }
 0x451   : > { %v2303_v23 = vpop.f32.mrb[40].mxu0 }
 0x452   : > { %v1762_v49 = vadd.f32 %v2303_v23, %v1666_v60  ;;  %v1756_v50 = vpop.f32.mrb[41].mxu0 }
 0x453   : > { %v1757_v63 = vadd.f32 %v1756_v50, %v1661_v21 }
 0x454   : > { %vm1776_vm13 = vcmp.gt.f32.partialorder %v1762_v49, 0.0  ;;  %v1782_v52 = vmul.f32 %v1780_v25, %v1762_v49 }
 0x455   : > { %vm1775_vm14 = vcmp.gt.f32.partialorder %v1757_v63, 0.0  ;;  %v1781_v4 = vmul.f32 %v1780_v25, %v1757_v63  ;;  %v2306_v0 = vpop.f32.mrb[42].mxu0 }
 0x456   : > { %v1786_v33 = vsel %vm1776_vm13, %v1762_v49, %v1782_v52  ;;  %v1772_v36 = vadd.f32 %v2306_v0, %v1676_v61  ;;  %v1766_v2 = vpop.f32.mrb[43].mxu0 }
 0x457   : > { %v1785_v11 = vsel %vm1775_vm14, %v1757_v63, %v1781_v4  ;;  %v1767_v3 = vadd.f32 %v1766_v2, %v1671_v30 }
 0x458   : > { %v2415_v13 = vpack.c.bf16 %v1786_v33, %v1785_v11  ;;  %vm1778_vm0 = vcmp.gt.f32.partialorder %v1772_v36, 0.0  ;;  %v1784_v16 = vmul.f32 %v1780_v25, %v1772_v36 }
 0x459   : > { %vm1777_vm15 = vcmp.gt.f32.partialorder %v1767_v3, 0.0  ;;  %v1783_v41 = vmul.f32 %v1780_v25, %v1767_v3 }
 0x45a   : > { %v1788_v43 = vsel %vm1778_vm0, %v1772_v36, %v1784_v16  ;;  %2416 = vmatpush3.bf16.msra.mxu1 %v2415_v13 }
 0x45b   : > { %v1787_v45 = vsel %vm1777_vm15, %v1767_v3, %v1783_v41  ;;  %2417 = vmatprep.subr.bf16.mxu1 %v2561_v46 }
 0x45c   : > { %v2418_v54 = vpack.c.bf16 %v1788_v43, %v1787_v45 }
 0x45e   : > { %2419 = vmatpush3.bf16.msra.mxu1 %v2418_v54 }
 0x461   : > { %2316 = vmatmul.mubr.msk.f32.vlgmr.msra.gmra.mrb[32].mxu1 %vm1796_vm1, %v1789_v19 }
 0x534   : > { %v1866_v15 = vpop.f32.mrb[32].mxu1 }
 0x535   : > { %v1867_v20 = vadd.f32 %v1866_v15, %v1794_v7  ;;  %v2317_v8 = vpop.f32.mrb[33].mxu1 }
 0x537   : > { %1870 = vst [vmem:[%s487_s20] sm:$0xff] %v1867_v20 }
 0x538   : > { %2504 = shalt.err (!%p2501_p2)
}
 0x539   : > { %s2505_s13 = scalar_lea.hbm %s3352_s11, 128  ;;  %s2509_s0 = scalar_lea.hbm %s3408_s12, 256 }
 0x53a   : > { %p2506_p3 = scmp.ne.s32.totalorder %s3352_s11, %s2505_s13  ;;  %p2510_p8 = scmp.lt.u32.totalorder %s3352_s11, %s3408_s12 }
 0x53b   : > { %p2511_p9 = scmp.lt.u32.totalorder %s2509_s0, %s2505_s13  ;;  %p2513_p11 = scmp.lt.u32.totalorder %s2505_s13, %s3352_s11 }
 0x53c   : > { %p2507_p4 = pnand %p2506_p3, %p3418_p10 }
 0x53d   : > { %p2512_p5 = por %p2511_p9, %p2510_p8 }
 0x53e   : > { %p2508_p7 = pneg %p2507_p4 }
 0x53f   : > { %p2514_p12 = por %p2513_p11, %p2512_p5 }
 0x541   : > { %p2515_p13 = pnand %p2514_p12, %p2508_p7 }
 0x543   : > { %2518 = shalt.err (!%p2515_p13)
}
 0x544   : > { %2424 = dma.vmem_to_hbm [thread:$0]  (%p3418_p10), %s3354_s19, 128, %s3352_s11, %s1872_s29  }
 0x545 PF: > { %s1897_s16 = sand.u32 1, %s2545_s21   ;;  %p3419_p0 = scmp.ne.s32.totalorder %s3414_s15, 0 }
 0x546   : > { %s1898_s17 = scalar_lea.sflag [#allocation4], %s1897_s16 }
 0x547   : > { %p2431_p1 = pnand %p1965_p6, %p3419_p0 }
 0x549   : > { %2540 = dma.done.wait (!%p2431_p1), %s1898_s17, 128  }
 0x54a   : > { %2542 = vsyncadd (!%p2431_p1), %s1898_s17, 4294967168  ;;  %p23_p2 = scmp.ge.s32.totalorder %s2655_s27, 4   ;;  %s3420_s21 = smov %s2549_s22 }
 0x54b   : > { %s3421_s22 = smov %s2553_s23  ;;  %s3422_s23 = smov %s2667_s30 }
 0x54c   : > { %s3423_s24 = smov %s2655_s27  ;;  %25 = sbr.rel (!%p23_p2) target bundleno = 7 (0x7), region = 151 }
 0x553   :  { %1903 = vsyncpa [#allocation4], 1 }
 0x554   :  { %1905 = vsyncpa [#allocation4 + $0x1], 1 }
 0x555   :  { %1906 = vsyncpa [#allocation5], 1 }
 0x556   :  { %1908 = vsyncpa [#allocation5 + $0x1], 1 }

</bundles_post_ra>
